<compile_context>
chip_gen: v7x
topology: tpu7x:2x2x1
jax: 0.10.0
libtpu: 0.0.40
codegen_flags: <defaults>
</compile_context>

<pallas_src>
import jax
import jax.numpy as jnp
from jax.experimental import pallas as pl
from jax.experimental.pallas import tpu as pltpu

IN_DIM = 9216
H1 = 256
H2 = 64
OUT_DIM = 3

TK = 4608              # fc1 contraction tile (9216 / 2), multiple of 256
H1_BLK = 128           # fc1 output-column block (H1 / 2), one half per core on v7x
N_K = IN_DIM // TK     # 2 reduction steps
N_C = H1 // H1_BLK     # 2 column halves (parallel axis)


def fc1_kernel(x_ref, w1_ref, b1_ref, h1_ref, acc_ref):
    """Computes one 128-wide column block of h1 = relu(x @ W1 + b1)."""
    k = pl.program_id(1)

    @pl.when(k == 0)
    def _():
        # Fold the fc1 bias into the accumulator init (saves an epilogue add).
        acc_ref[...] = jnp.broadcast_to(b1_ref[...], acc_ref.shape)

    # Partial fc1: accumulate x[:, k*TK:(k+1)*TK] @ W1[k*TK:(k+1)*TK, cols].
    # bf16 inputs, f32 accumulation on the MXU.
    acc_ref[...] += jnp.dot(x_ref[...], w1_ref[...],
                            preferred_element_type=jnp.float32)

    @pl.when(k == pl.num_programs(1) - 1)
    def _():
        # fc1 ReLU (drop1 is identity in eval mode).
        h1_ref[...] = jnp.maximum(acc_ref[...], 0.0)


def coherence_classifier(x, params):
    """x: [B, 9216] float32 -> logits [B, 3] float32."""
    w1, b1, w2, b2, w3, b3 = params   # w1 is stored bf16; everything else f32
    B = x.shape[0]

    x_bf16 = x.astype(jnp.bfloat16)
    b1r = b1.reshape(1, H1).astype(jnp.float32)

    h1 = pl.pallas_call(
        fc1_kernel,
        out_shape=jax.ShapeDtypeStruct((B, H1), jnp.float32),
        grid_spec=pltpu.PrefetchScalarGridSpec(
            num_scalar_prefetch=0,
            grid=(N_C, N_K),                                     # (cols, K)
            in_specs=[
                pl.BlockSpec((B, TK), lambda c, k: (0, k)),       # x tile (bf16)
                pl.BlockSpec((TK, H1_BLK), lambda c, k: (k, c)),  # W1 tile (bf16)
                pl.BlockSpec((1, H1_BLK), lambda c, k: (0, c)),   # b1 column block
            ],
            out_specs=pl.BlockSpec((B, H1_BLK), lambda c, k: (0, c)),
            scratch_shapes=[pltpu.VMEM((B, H1_BLK), jnp.float32)],
        ),
        compiler_params=pltpu.CompilerParams(
            # Column halves split across TensorCores on v7x; K axis is the
            # reduction (output block revisited, so it must stay "arbitrary").
            dimension_semantics=("parallel", "arbitrary")),
    )(x_bf16, w1, b1r)

    # fc2 + ReLU (drop2 = identity in eval) and fc3 are tiny; run in plain XLA.
    h2 = jnp.maximum(h1 @ w2 + b2, 0.0)
    return h2 @ w3 + b3


def init_params(key):
    """Deterministic synthetic parameters matching nn.Linear shapes."""
    k1, k2, k3, k4, k5, k6 = jax.random.split(key, 6)
    # Stored as [in, out] (transpose of PyTorch's [out, in]); math is identical.
    # W1 is stored in bf16 once (it is streamed from HBM every call).
    w1 = (jax.random.normal(k1, (IN_DIM, H1), jnp.float32) * 0.02
          ).astype(jnp.bfloat16)
    b1 = jax.random.normal(k2, (H1,), jnp.float32) * 0.02
    w2 = jax.random.normal(k3, (H1, H2), jnp.float32) * 0.02
    b2 = jax.random.normal(k4, (H2,), jnp.float32) * 0.02
    w3 = jax.random.normal(k5, (H2, OUT_DIM), jnp.float32) * 0.02
    b3 = jax.random.normal(k6, (OUT_DIM,), jnp.float32) * 0.02
    return (w1, b1, w2, b2, w3, b3)


def reference_forward_bf16(x, params):
    """Reference matching the kernel's bf16-input / f32-accumulate fc1."""
    w1, b1, w2, b2, w3, b3 = params
    xf = x.astype(jnp.bfloat16).astype(jnp.float32)
    w1f = w1.astype(jnp.float32)
    h1 = jnp.maximum(xf @ w1f + b1, 0.0)      # drop1 = identity (eval)
    h2 = jnp.maximum(h1 @ w2 + b2, 0.0)       # drop2 = identity (eval)
    return h2 @ w3 + b3


def reference_forward_f32(x, params):
    """Pure f32 reference (original module semantics)."""
    w1, b1, w2, b2, w3, b3 = params
    h1 = jnp.maximum(x @ w1.astype(jnp.float32) + b1, 0.0)
    h2 = jnp.maximum(h1 @ w2 + b2, 0.0)
    return h2 @ w3 + b3


if __name__ == "__main__":
    key = jax.random.PRNGKey(0)
    kx, kp = jax.random.split(key)

    B = 8
    x = jax.random.normal(kx, (B, IN_DIM), jnp.float32)
    params = init_params(kp)

    out = coherence_classifier(x, params)
    out = jax.block_until_ready(out)
    assert out.shape == (B, OUT_DIM), out.shape

    # Tight check against a reference with identical bf16 fc1 numerics.
    ref_bf16 = reference_forward_bf16(x, params)
    assert jnp.allclose(out, ref_bf16, atol=2e-3, rtol=2e-3), \
        float(jnp.max(jnp.abs(out - ref_bf16)))

    # Looser sanity check against the pure f32 forward of the original module.
    ref_f32 = reference_forward_f32(x, params)
    assert jnp.allclose(out, ref_f32, atol=5e-2, rtol=5e-2), \
        float(jnp.max(jnp.abs(out - ref_f32)))

    print("KERNEL_OK")
</pallas_src>

<mosaic_0001>
module attributes {stable_mosaic.version = 11 : i64} {
  func.func @fc1_kernel(%arg0: i32, %arg1: i32, %arg2: memref<8x4608xbf16, #tpu.memory_space<vmem>>, %arg3: memref<4608x128xbf16, #tpu.memory_space<vmem>>, %arg4: memref<1x128xf32, #tpu.memory_space<vmem>>, %arg5: memref<8x128xf32, #tpu.memory_space<vmem>>, %arg6: memref<8x128xf32, #tpu.memory_space<vmem>>) attributes {dimension_semantics = [#tpu.dimension_semantics<parallel>, #tpu.dimension_semantics<arbitrary>], iteration_bounds = array<i64: 2, 2>, scalar_prefetch = 0 : i64, scratch_operands = 1 : i64, tpu.core_type = #tpu.core_type<tc>, window_params = [{transform_indices = @transform_0, window_bounds = array<i64: 8, 4608>}, {transform_indices = @transform_1, window_bounds = array<i64: 4608, 128>}, {transform_indices = @transform_2, window_bounds = array<i64: 1, 128>}, {transform_indices = @transform_3, window_bounds = array<i64: 8, 128>}]} {
    %c0_i32 = arith.constant 0 : i32
    %0 = arith.cmpi eq, %arg1, %c0_i32 : i32
    %1 = arith.extui %0 : i1 to i32
    %c0_i32_0 = arith.constant 0 : i32
    %2 = arith.cmpi ne, %1, %c0_i32_0 : i32
    scf.if %2 {
      %c0_9 = arith.constant 0 : index
      %c0_10 = arith.constant 0 : index
      %12 = vector.load %arg4[%c0_9, %c0_10] : memref<1x128xf32, #tpu.memory_space<vmem>>, vector<1x128xf32>
      %13 = vector.shape_cast %12 : vector<1x128xf32> to vector<1x128xf32>
      %14 = vector.broadcast %13 : vector<1x128xf32> to vector<8x128xf32>
      %c0_11 = arith.constant 0 : index
      %c0_12 = arith.constant 0 : index
      %15 = vector.load %arg6[%c0_11, %c0_12] : memref<8x128xf32, #tpu.memory_space<vmem>>, vector<8x128xf32>
      tpu.vector_store %arg6[%c0_11, %c0_12], %14 {strides = array<i32>} : memref<8x128xf32, #tpu.memory_space<vmem>>, vector<8x128xf32>,
    } else {
    }
    %c0 = arith.constant 0 : index
    %c0_1 = arith.constant 0 : index
    %3 = vector.load %arg6[%c0, %c0_1] : memref<8x128xf32, #tpu.memory_space<vmem>>, vector<8x128xf32>
    %c0_2 = arith.constant 0 : index
    %c0_3 = arith.constant 0 : index
    %4 = vector.load %arg2[%c0_2, %c0_3] : memref<8x4608xbf16, #tpu.memory_space<vmem>>, vector<8x4608xbf16>
    %c0_4 = arith.constant 0 : index
    %c0_5 = arith.constant 0 : index
    %5 = vector.load %arg3[%c0_4, %c0_5] : memref<4608x128xbf16, #tpu.memory_space<vmem>>, vector<4608x128xbf16>
    %cst = arith.constant dense<0.000000e+00> : vector<8x128xf32>
    %6 = tpu.matmul %4, %5, %cst {dimension_numbers = #tpu.dot_dimension_numbers<[1], [0], [0], [1], [0, 0, 1, 1], [], []>} : vector<8x4608xbf16>, vector<4608x128xbf16>, vector<8x128xf32> -> vector<8x128xf32>
    %7 = arith.addf %3, %6 : vector<8x128xf32>
    %c0_6 = arith.constant 0 : index
    %c0_7 = arith.constant 0 : index
    %8 = vector.load %arg6[%c0_6, %c0_7] : memref<8x128xf32, #tpu.memory_space<vmem>>, vector<8x128xf32>
    tpu.vector_store %arg6[%c0_6, %c0_7], %7 {strides = array<i32>} : memref<8x128xf32, #tpu.memory_space<vmem>>, vector<8x128xf32>,
    %c1_i32 = arith.constant 1 : i32
    %9 = arith.cmpi eq, %arg1, %c1_i32 : i32
    %10 = arith.extui %9 : i1 to i32
    %c0_i32_8 = arith.constant 0 : i32
    %11 = arith.cmpi ne, %10, %c0_i32_8 : i32
    scf.if %11 {
      %c0_9 = arith.constant 0 : index
      %c0_10 = arith.constant 0 : index
      %12 = vector.load %arg6[%c0_9, %c0_10] : memref<8x128xf32, #tpu.memory_space<vmem>>, vector<8x128xf32>
      %cst_11 = arith.constant 0.000000e+00 : f32
      %13 = vector.broadcast %cst_11 : f32 to vector<8x128xf32>
      %14 = arith.maximumf %12, %13 : vector<8x128xf32>
      %c0_12 = arith.constant 0 : index
      %c0_13 = arith.constant 0 : index
      %15 = vector.load %arg5[%c0_12, %c0_13] : memref<8x128xf32, #tpu.memory_space<vmem>>, vector<8x128xf32>
      tpu.vector_store %arg5[%c0_12, %c0_13], %14 {strides = array<i32>} : memref<8x128xf32, #tpu.memory_space<vmem>>, vector<8x128xf32>,
    } else {
    }
    return
  }
  func.func @transform_0(%arg0: i32, %arg1: i32) -> (i32, i32) {
    %c0_i32 = arith.constant 0 : i32
    %c0_i32_0 = arith.constant 0 : i32
    return %c0_i32, %arg1 : i32, i32
  }
  func.func @transform_1(%arg0: i32, %arg1: i32) -> (i32, i32) {
    %c0_i32 = arith.constant 0 : i32
    return %arg1, %arg0 : i32, i32
  }
  func.func @transform_2(%arg0: i32, %arg1: i32) -> (i32, i32) {
    %c0_i32 = arith.constant 0 : i32
    %c0_i32_0 = arith.constant 0 : i32
    return %c0_i32, %arg0 : i32, i32
  }
  func.func @transform_3(%arg0: i32, %arg1: i32) -> (i32, i32) {
    %c0_i32 = arith.constant 0 : i32
    %c0_i32_0 = arith.constant 0 : i32
    return %c0_i32, %arg0 : i32, i32
  }
}

</mosaic_0001>

<bundles_post_ra>
// kernel: tpu_custom_call.1
= control target key start
LH: loop header
LB: loop body
LE: loop exit
PB: predicated region body
PF: predicated region fallthrough
CT: control target
= control target key end

     0   :  { %s5788_s0 = inlined_call_operand.hbm [shape: bf16[8,9216], index: 0, kind: input, shape index: {}]   ;;  %s5789_s1 = inlined_call_operand.hbm [shape: bf16[9216,256], index: 1, kind: input, shape index: {}]   ;;  %s5790_s2 = inlined_call_operand.hbm [shape: f32[1,256], index: 2, kind: input, shape index: {}]   ;;  %s5791_s3 = inlined_call_operand.hbm [shape: f32[8,256], index: 3, kind: output, shape index: {}]  }
   0x1   :  { %5804 = sst [smem:[#allocation20_spill]] %s5788_s0 }
   0x2   :  { %5805 = sst [smem:[#allocation21_spill]] %s5789_s1 }
   0x3   :  { %5806 = sst [smem:[#allocation22_spill]] %s5791_s3 }
   0x4   :  { %8 = vsyncpa [#allocation4], 0 }
   0x5   :  { %10 = vsyncpa [#allocation4 + $0x1], 0 }
   0x6   :  { %11 = vsyncpa [#allocation7], 0 }
   0x7   :  { %13 = vsyncpa [#allocation7 + $0x1], 0 }
   0x8   :  { %14 = vsyncpa [#allocation5], 0 }
   0x9   :  { %16 = vsyncpa [#allocation5 + $0x1], 0  ;;  %s5083_s12 = smov 0   ;;  %s5085_s13 = smov 0  }
   0xa   :  { %s5087_s14 = smov 0   ;;  %s5089_s15 = smov 0  }
   0xb   :  { %s5091_s16 = smov 0   ;;  %s5093_s17 = smov 0  }
   0xc   :  { %s5095_s18 = smov 0   ;;  %s5097_s19 = smov 0  }
   0xd   :  { %s5099_s20 = smov 0   ;;  %s5101_s21 = smov 0  }
   0xe   :  { %s5103_s22 = smov 0   ;;  %s5105_s23 = smov 0  }
   0xf   :  { %s5107_s24 = smov 0   ;;  %s5109_s25 = smov 0  }
  0x10 LB: > { %5807 = sst [smem:[#allocation14_spill]] %s5034_s20  ;;  %p5799_p0 = scmp.eq.s32.totalorder %s5054_s25, 0  ;;  %s5054_s25 = sphi %s5109_s25, %s22_s25   ;;  %s5050_s24 = sphi %s5107_s24, %s5856_s24   ;;  %s5046_s23 = sphi %s5105_s23, %s5845_s23   ;;  %s5042_s22 = sphi %s5103_s22, %s5855_s22   ;;  %s5038_s21 = sphi %s5101_s21, %s5844_s21   ;;  %s5034_s20 = sphi %s5099_s20, %s5843_s20   ;;  %s5030_s19 = sphi %s5097_s19, %s5854_s19   ;;  %s5026_s18 = sphi %s5095_s18, %s5853_s18   ;;  %s5022_s17 = sphi %s5093_s17, %s5852_s17   ;;  %s5018_s16 = sphi %s5091_s16, %s5851_s16   ;;  %s5014_s15 = sphi %s5089_s15, %s5850_s15   ;;  %s5010_s14 = sphi %s5087_s14, %s5849_s14   ;;  %s5006_s13 = sphi %s5085_s13, %s5848_s13   ;;  %s5002_s12 = sphi %s5083_s12, %s5847_s12  }
  0x11   : > { %5808 = sst [smem:[#allocation15_spill]] %s5042_s22  ;;  %p76_p1 = scmp.ne.s32.totalorder %s5022_s17, %s5018_s16 }
  0x12   : > { %5809 = sst [smem:[#allocation16_spill]] %s5046_s23  ;;  %p5792_p4 = scmp.lt.s32.totalorder %s5054_s25, 4 }
  0x13   : > { %p78_p3 = por %p76_p1, %p5799_p0  ;;  %s177_s28 = sand.u32 1, %s5054_s25  }
  0x14   : > { %s179_s29 = sand.u32 1, %s5022_s17   ;;  %s3946_s4 = smul.u32 1152, %s5046_s23 }
  0x15   : > { %s4344_s30 = smul.u32 2304, %s179_s29  ;;  %p5168_p5 = pnand %p5792_p4, %p78_p3 }
  0x16   : > { %s187_s6 = sadd.s32 %s5050_s24, %s3946_s4  ;;  %s5811_s1 = sld [smem:[#allocation21_spill]] }
  0x17   : > { %s181_s7 = scalar_lea.vmem [#allocation6], %s4344_s30  ;;  %s3610_s9 = sshll.u32 %s187_s6, 6 }
  0x18   : > { %s190_s8 = sshll.u32 %s181_s7, 4  ;;  %s5180_s29 = scalar_lea.sflag [#allocation7], %s177_s28  ;;  %s5173_s8 = int_to_ptr.vmem [resolvable:$true] %s190_s8 }
  0x19   : > { %p4812_p7 = pneg %p5168_p5 }
  0x1c   : > { %s5178_s27 = scalar_lea.hbm %s5811_s1, %s3610_s9  ;;  %s4815_s6 = scalar_lea.hbm %s5811_s1, 147456 }
  0x1d   : > { %s4810_s26 = scalar_lea.hbm %s5178_s27, 36864  ;;  %p4816_p10 = scmp.lt.u32.totalorder %s5178_s27, %s5811_s1 }
  0x1e   : > { %p4811_p6 = scmp.ne.s32.totalorder %s5178_s27, %s4810_s26  ;;  %p4817_p11 = scmp.lt.u32.totalorder %s4815_s6, %s4810_s26 }
  0x1f   : > { %p4819_p13 = scmp.lt.u32.totalorder %s4810_s26, %s5178_s27 }
  0x20   : > { %p4813_p8 = pnand %p4812_p7, %p4811_p6  ;;  %p4818_p12 = por %p4817_p11, %p4816_p10 }
  0x22   : > { %p4814_p9 = pneg %p4813_p8  ;;  %p4820_p1 = por %p4819_p13, %p4818_p12 }
  0x24   : > { %p4821_p3 = pnand %p4820_p1, %p4814_p9 }
  0x26   : > { %4824 = shalt.err (!%p4821_p3)
}
  0x27   : > { %s4825_s28 = scalar_lea.vmem %s5173_s8, 36864  ;;  %s5056_s10 = smov [#allocation6]  }
  0x28   : > { %p4826_p6 = scmp.ne.s32.totalorder %s5173_s8, %s4825_s28  ;;  %s4830_s11 = sshll.u32 %s5056_s10, 4  ;;  %s4831_s11 = int_to_ptr.vmem [resolvable:$false] %s4830_s11 }
  0x29   : > { %s4832_s30 = scalar_lea.vmem %s4831_s11, 73728  ;;  %p4833_p2 = scmp.lt.s32.totalorder %s5173_s8, %s4831_s11 }
  0x2a   : > { %p4828_p8 = pnand %p4826_p6, %p4812_p7  ;;  %p4834_p10 = scmp.lt.s32.totalorder %s4832_s30, %s4825_s28 }
  0x2c   : > { %p4829_p4 = pneg %p4828_p8  ;;  %p4835_p11 = por %p4834_p10, %p4833_p2 }
  0x2e   : > { %p4836_p12 = pnand %p4835_p11, %p4829_p4 }
  0x30   : > { %4839 = shalt.err (!%p4836_p12)
}
  0x31   : > { %s5057_s26 = smov 128   ;;  %s5058_s4 = smov 64  }
  0x32   : > { %s5059_s6 = smov 4   ;;  %p3612_p2 = scmp.ge.s32.totalorder %s5054_s25, 1 }
  0x33   : > { %4361 = dma.hbm_to_vmem [thread:$0]  (!%p5168_p5), %s5178_s27, 36864, %s5173_s8, %s5180_s29, %s5057_s26, %s5058_s4, %s5059_s6  }
  0x34   : > { %p215_p4 = scmp.lt.s32.totalorder %s5054_s25, 5  ;;  %s5215_s9 = sadd.s32 4294967295, %s5054_s25  }
  0x35   : > { %s31_s28 = sadd.s32 1, %s5046_s23  ;;  %s41_s10 = sadd.s32 1, %s5034_s20 }
  0x36   : > { %p5210_p7 = pnand %p3612_p2, %p215_p4  ;;  %p32_p9 = scmp.ge.s32.totalorder %s31_s28, 2 }
  0x37   : > { %p48_p5 = scmp.ne.s32.totalorder %s5034_s20, %s5030_s19  ;;  %p54_p13 = scmp.ne.s32.totalorder %s5030_s19, %s5026_s18 }
  0x38   : > { %s5812_s7 = scalar_select %p5210_p7, 1, 0 }
  0x39   : > { %p5798_p1 = scmp.eq.s32.totalorder %s5215_s9, 0  ;;  %s5858_s28 = smov (%p32_p9, %s31_s28), 0 }
  0x3a   : > { %5813 = sst [smem:[#allocation17_spill]] %s5858_s28  ;;  %s5814_s27 = sadd.s32 1, %s5050_s24 }
  0x3b   : > { %s5860_s27 = smov (!%p32_p9, %s5814_s27), %s5050_s24  ;;  %s38_s5 = ssub.s32 %s5046_s23, %s5858_s28 }
  0x3c   : > { %p5233_p3 = por %p5799_p0, %p48_p5  ;;  %p36_p6 = scmp.ge.s32.totalorder %s5860_s27, 2 }
  0x3d   : > { %p39_p8 = scmp.eq.s32.totalorder %s38_s5, 0  ;;  %p5239_p10 = por %p5798_p1, %p54_p13 }
  0x3e   : > { %p5817_p11 = scmp.ne.s32.totalorder %s5018_s16, %s5014_s15  ;;  %s5862_s27 = smov (%p36_p6, %s5860_s27), 0 }
  0x3f   : > { %s5816_s18 = scalar_select %p5239_p10, 1, 0 }
  0x40   : > { %p5248_p12 = por %p5817_p11, %p5798_p1  ;;  %5819 = sst [smem:[#allocation18_spill]] %s5862_s27 }
  0x41   : > { %s5255_s30 = scalar_select %p39_p8, %s5034_s20, %s41_s10  }
  0x42   : > { %s5818_s11 = scalar_select %p5248_p12, 1, 0 }
  0x43   : > { %5820 = sst [smem:[#allocation19_spill]] %s5255_s30  ;;  %s5259_s26 = ssub.s32 %s5050_s24, %s5862_s27 }
  0x44   : > { %s158_s4 = sand.u32 1, %s5034_s20   ;;  %s66_s6 = sor.u32 %s5259_s26, %s38_s5 }
  0x45   : > { %p67_p2 = scmp.eq.s32.totalorder %s66_s6, 0  ;;  %s4343_s1 = smul.u32 144, %s158_s4 }
  0x46   : > { %s3945_s28 = smul.u32 2304, %s5046_s23  ;;  %p5821_p4 = scmp.lt.s32.totalorder %s5054_s25, 4 }
  0x47   : > { %s5823_s3 = sadd.s32 1, %s5022_s17  ;;  %s5824_s0 = sld [smem:[#allocation20_spill]] }
  0x48   : > { %p5268_p9 = pnand %p5821_p4, %p5233_p3  ;;  %s162_s5 = scalar_lea.vmem [#allocation3], %s4343_s1 }
  0x49   : > { %s5275_s22 = scalar_select %p67_p2, %s5022_s17, %s5823_s3  }
  0x4a   : > { %s170_s8 = sshll.u32 %s162_s5, 4  ;;  %s159_s6 = scalar_lea.sflag [#allocation4], %s158_s4  ;;  %s5282_s8 = int_to_ptr.vmem [resolvable:$true] %s170_s8 }
  0x4b   : > { %p4842_p13 = pneg %p5268_p9 }
  0x4d   : > { %s5280_s30 = scalar_lea.hbm %s5824_s0, %s3945_s28  ;;  %s4845_s27 = scalar_lea.hbm %s5824_s0, 4608 }
  0x4e   : > { %s4840_s23 = scalar_lea.hbm %s5280_s30, 2304  ;;  %p4846_p8 = scmp.lt.u32.totalorder %s5280_s30, %s5824_s0 }
  0x4f   : > { %p4841_p5 = scmp.ne.s32.totalorder %s5280_s30, %s4840_s23  ;;  %p4847_p11 = scmp.lt.u32.totalorder %s4845_s27, %s4840_s23 }
  0x50   : > { %p4849_p4 = scmp.lt.u32.totalorder %s4840_s23, %s5280_s30 }
  0x51   : > { %p4843_p3 = pnand %p4842_p13, %p4841_p5  ;;  %p4848_p2 = por %p4847_p11, %p4846_p8 }
  0x53   : > { %p4844_p6 = pneg %p4843_p3  ;;  %p4850_p1 = por %p4849_p4, %p4848_p2 }
  0x55   : > { %p4851_p0 = pnand %p4850_p1, %p4844_p6 }
  0x57   : > { %4854 = shalt.err (!%p4851_p0)
}
  0x58   : > { %s4855_s1 = scalar_lea.vmem %s5282_s8, 2304  ;;  %s5060_s4 = smov [#allocation3]  }
  0x59   : > { %p4856_p5 = scmp.ne.s32.totalorder %s5282_s8, %s4855_s1  ;;  %s4860_s5 = sshll.u32 %s5060_s4, 4  ;;  %s4861_s5 = int_to_ptr.vmem [resolvable:$false] %s4860_s5 }
  0x5a   : > { %s4862_s20 = scalar_lea.vmem %s4861_s5, 4608  ;;  %p4863_p10 = scmp.lt.s32.totalorder %s5282_s8, %s4861_s5 }
  0x5b   : > { %p4858_p3 = pnand %p4856_p5, %p4842_p13  ;;  %p4864_p8 = scmp.lt.s32.totalorder %s4862_s20, %s4855_s1 }
  0x5d   : > { %p4859_p12 = pneg %p4858_p3  ;;  %p4865_p11 = por %p4864_p8, %p4863_p10 }
  0x5f   : > { %p4866_p2 = pnand %p4865_p11, %p4859_p12 }
  0x61   : > { %4869 = shalt.err (!%p4866_p2)
}
  0x62   : > { %4358 = dma.hbm_to_vmem [thread:$0]  (!%p5268_p9), %s5280_s30, 2304, %s5282_s8, %s159_s6  }
  0x63   : > { %s3605_s23 = sadd.s32 4294967294, %s5054_s25   ;;  %p93_p0 = scmp.eq.s32.totalorder %s5259_s26, 0 }
  0x64   : > { %s95_s15 = sadd.s32 1, %s5010_s14  ;;  %p102_p1 = scmp.ne.s32.totalorder %s5010_s14, %s5006_s13 }
  0x65   : > { %p108_p10 = scmp.ne.s32.totalorder %s5006_s13, %s5002_s12  ;;  %p5825_p12 = scmp.eq.s32.totalorder %s5054_s25, 0 }
  0x66   : > { %s5317_s3 = scalar_select %p93_p0, %s5010_s14, %s95_s15  }
  0x67   : > { %p104_p13 = por %p102_p1, %p5825_p12  ;;  %p5826_p6 = scmp.eq.s32.totalorder %s5215_s9, 0 }
  0x68   : > { %p132_p5 = scmp.eq.s32.totalorder %s5215_s9, 3  ;;  %p138_p3 = scmp.eq.s32.totalorder %s3605_s23, 3 }
  0x69   : > { %p5323_p4 = por %p108_p10, %p5826_p6  ;;  %s202_s27 = sand.u32 1, %s5010_s14  }
  0x6a   : > { %s3611_s10 = sshll.u32 %s5050_s24, 4  ;;  %p5330_p9 = por %p132_p5, %p102_p1 }
  0x6b   : > { %s5827_s28 = scalar_select %p5323_p4, 1, 0 }
  0x6c   : > { %s5828_s30 = scalar_select %p5330_p9, 1, 0 }
  0x6d   : > { %p5334_p8 = por %p138_p3, %p108_p10  ;;  %s5341_s1 = scalar_lea.hbm %s5790_s2, %s3611_s10 }
  0x6e   : > { %s203_s4 = scalar_lea.vmem [#allocation8], %s202_s27  ;;  %p5830_p11 = scmp.lt.s32.totalorder %s5054_s25, 4 }
  0x6f   : > { %s5829_s26 = scalar_select %p5334_p8, 1, 0 }
  0x70   : > { %s210_s5 = sshll.u32 %s203_s4, 4  ;;  %p5345_p2 = pnand %p5830_p11, %p104_p13  ;;  %s211_s5 = int_to_ptr.vmem [resolvable:$true] %s210_s5 }
  0x71   : > { %s4870_s23 = scalar_lea.hbm %s5341_s1, 16  ;;  %s4875_s27 = scalar_lea.hbm %s5790_s2, 32 }
  0x72   : > { %p4871_p0 = scmp.ne.s32.totalorder %s5341_s1, %s4870_s23  ;;  %p4872_p1 = pneg %p5345_p2 }
  0x73   : > { %p4876_p13 = scmp.lt.u32.totalorder %s5341_s1, %s5790_s2  ;;  %p4877_p6 = scmp.lt.u32.totalorder %s4875_s27, %s4870_s23 }
  0x74   : > { %p4873_p10 = pnand %p4872_p1, %p4871_p0  ;;  %p4879_p3 = scmp.lt.u32.totalorder %s4870_s23, %s5341_s1 }
  0x75   : > { %p4878_p5 = por %p4877_p6, %p4876_p13 }
  0x76   : > { %p4874_p12 = pneg %p4873_p10 }
  0x77   : > { %p4880_p11 = por %p4879_p3, %p4878_p5 }
  0x79   : > { %p4881_p8 = pnand %p4880_p11, %p4874_p12 }
  0x7b   : > { %4884 = shalt.err (!%p4881_p8)
}
  0x7c   : > { %s4885_s4 = scalar_lea.vmem %s211_s5, 16  ;;  %s5061_s0 = smov [#allocation8]  }
  0x7d   : > { %p4886_p9 = scmp.ne.s32.totalorder %s211_s5, %s4885_s4  ;;  %s4890_s15 = sshll.u32 %s5061_s0, 4  ;;  %s4891_s15 = int_to_ptr.vmem [resolvable:$false] %s4890_s15 }
  0x7e   : > { %s4892_s10 = scalar_lea.vmem %s4891_s15, 32  ;;  %p4893_p4 = scmp.lt.s32.totalorder %s211_s5, %s4891_s15 }
  0x7f   : > { %p4888_p0 = pnand %p4886_p9, %p4872_p1  ;;  %p4894_p7 = scmp.lt.s32.totalorder %s4892_s10, %s4885_s4 }
  0x81   : > { %p4889_p10 = pneg %p4888_p0  ;;  %p4895_p6 = por %p4894_p7, %p4893_p4 }
  0x83   : > { %p4896_p13 = pnand %p4895_p6, %p4889_p10 }
  0x85   : > { %4899 = shalt.err (!%p4896_p13)
}
  0x86   : > { %4364 = dma.hbm_to_vmem [thread:$0]  (!%p5345_p2), %s5341_s1, 16, %s211_s5, %s5180_s29  }
  0x87   : > { %p5832_p8 = scmp.ne.s32.totalorder %s5812_s7, 0 }
  0x88   : > { %s221_s23 = sand.u32 (!%p5832_p8), 1, %s5030_s19   ;;  %p5833_p9 = scmp.ne.s32.totalorder (!%p5832_p8), %s5816_s18, 0 }
  0x89   : > { %219 = sbr.rel (%p5832_p8) target bundleno = 711 (0x2c7), region = 32  ;;  %s222_s0 = scalar_lea.sflag (!%p5832_p8), [#allocation4], %s221_s23 }
  0x8a   : > { %s4345_s27 = smul.u32 (!%p5832_p8), 144, %s221_s23 }
  0x8c   : > { %s5374_s8 = scalar_lea.vmem (!%p5832_p8), [#allocation3], %s4345_s27 }
  0x90   : > { %4985 = dma.done.wait (%p5833_p9), %s222_s0, 2304  }
  0x91   : > { %4987 = vsyncadd (%p5833_p9), %s222_s0, 4294964992  ;;  %s230_s20 = sand.u32 1, %s5215_s9   ;;  %s232_s29 = sand.u32 1, %s5018_s16  }
  0x92   : > { %s4346_s1 = smul.u32 2304, %s232_s29  ;;  %s231_s7 = scalar_lea.sflag [#allocation7], %s230_s20 }
  0x93   : > { %p5834_p7 = scmp.ne.s32.totalorder %s5818_s11, 0 }
  0x94   : > { %s5382_s5 = scalar_lea.vmem [#allocation6], %s4346_s1 }
  0x95   : > { %4989 = dma.done.wait (%p5834_p7), %s231_s7, 36864  }
  0x96   : > { %4991 = vsyncadd (%p5834_p7), %s231_s7, 4294930432  ;;  %s5389_s6 = sand.u32 1, %s5006_s13   ;;  %p5835_p4 = scmp.ne.s32.totalorder %s5827_s28, 0 }
  0x97   : > { %s242_s18 = scalar_lea.vmem [#allocation8], %s5389_s6 }
  0x98   : > { %4993 = dma.done.wait (%p5835_p4), %s231_s7, 16  }
  0x99   : > { %4995 = vsyncadd (%p5835_p4), %s231_s7, 4294967280  ;;  %s3613_s9 = sshll.u32 %s5389_s6, 3  ;;  %p3614_p2 = scmp.ne.s32.totalorder %s5038_s21, 0 }
  0x9a   : > { %s5397_s4 = scalar_lea.vmem [#allocation9], %s3613_s9  ;;  %v3615_v0 = vld [vmem:[%s242_s18] ss:$0 sm:$0xff] (!%p3614_p2) }
  0x9b   : > { %280 = sbr.rel (%p3614_p2) target bundleno = 162 (0xa2), region = 48  ;;  %288 = vst [vmem:[#allocation2] sm:$0xff] (!%p3614_p2), %v3615_v0 }
  0xa2 PF: > { %v4486_v1 = vld [vmem:[%s5382_s5 + $0x40] sm:$0xff]   ;;  %v4490_v5 = vld [vmem:[%s5382_s5 + $0x48] sm:$0xff]   ;;  %v4494_v9 = vld [vmem:[%s5382_s5 + $0x50] sm:$0xff]   ;;  %p3940_p1 = scmp.ne.s32.totalorder %s5038_s21, 1 }
  0xa3   : > { %v4487_v2 = vld [vmem:[%s5382_s5 + $0xc0] sm:$0xff]   ;;  %3947 = vmatprep.subr.bf16.mxu0 %v4486_v1  ;;  %v4491_v6 = vld [vmem:[%s5382_s5 + $0xc8] sm:$0xff]   ;;  %v4495_v10 = vld [vmem:[%s5382_s5 + $0xd0] sm:$0xff]  }
  0xa4   : > { %v4488_v3 = vld [vmem:[%s5382_s5] sm:$0xff]   ;;  %3969 = vmatprep.subr.bf16.mxu1 %v4487_v2  ;;  %v4492_v7 = vld [vmem:[%s5382_s5 + $0x8] sm:$0xff]   ;;  %v4496_v11 = vld [vmem:[%s5382_s5 + $0x10] sm:$0xff]  }
  0xa5   : > { %v4489_v4 = vld [vmem:[%s5382_s5 + $0x80] sm:$0xff]   ;;  %3948 = vmatpush3.bf16.msra.mxu0 %v4488_v3  ;;  %v4493_v8 = vld [vmem:[%s5382_s5 + $0x88] sm:$0xff]   ;;  %v4497_v12 = vld [vmem:[%s5382_s5 + $0x90] sm:$0xff]  }
  0xa6   : > { %3970 = vmatpush3.bf16.msra.mxu1 %v4489_v4  ;;  %3949 = vmatprep.subr.bf16.mxu0 %v4490_v5  ;;  %v4498_v13 = vld [vmem:[%s5382_s5 + $0x58] sm:$0xff]   ;;  %v4502_v17 = vld [vmem:[%s5382_s5 + $0x60] sm:$0xff]   ;;  %v4506_v21 = vld [vmem:[%s5382_s5 + $0x68] sm:$0xff]  }
  0xa7   : > { %3971 = vmatprep.subr.bf16.mxu1 %v4491_v6  ;;  %v4499_v14 = vld [vmem:[%s5382_s5 + $0xd8] sm:$0xff]   ;;  %v4503_v18 = vld [vmem:[%s5382_s5 + $0xe0] sm:$0xff]   ;;  %v4507_v22 = vld [vmem:[%s5382_s5 + $0xe8] sm:$0xff]  }
  0xa8   : > { %v4500_v15 = vld [vmem:[%s5382_s5 + $0x18] sm:$0xff]   ;;  %v4504_v19 = vld [vmem:[%s5382_s5 + $0x20] sm:$0xff]   ;;  %v4508_v23 = vld [vmem:[%s5382_s5 + $0x28] sm:$0xff]  }
  0xa9   : > { %3950 = vmatpush3.bf16.msra.mxu0 %v4492_v7  ;;  %v4501_v16 = vld [vmem:[%s5382_s5 + $0x98] sm:$0xff]   ;;  %v4505_v20 = vld [vmem:[%s5382_s5 + $0xa0] sm:$0xff]   ;;  %v4509_v24 = vld [vmem:[%s5382_s5 + $0xa8] sm:$0xff]  }
  0xaa   : > { %3972 = vmatpush3.bf16.msra.mxu1 %v4493_v8  ;;  %3951 = vmatprep.subr.bf16.mxu0 %v4494_v9  ;;  %v4510_v25 = vld [vmem:[%s5382_s5 + $0x70] sm:$0xff]   ;;  %v4514_v29 = vld [vmem:[%s5382_s5 + $0x78] sm:$0xff]   ;;  %v4522_v39 = vld [vmem:[%s5382_s5 + $0x140] sm:$0xff]  }
  0xab   : > { %3973 = vmatprep.subr.bf16.mxu1 %v4495_v10  ;;  %v4511_v26 = vld [vmem:[%s5382_s5 + $0xf0] sm:$0xff]   ;;  %v4515_v30 = vld [vmem:[%s5382_s5 + $0xf8] sm:$0xff]   ;;  %v4523_v40 = vld [vmem:[%s5382_s5 + $0x1c0] sm:$0xff]  }
  0xac   : > { %v4512_v27 = vld [vmem:[%s5382_s5 + $0x30] sm:$0xff]   ;;  %v4516_v31 = vld [vmem:[%s5382_s5 + $0x38] sm:$0xff]   ;;  %v4524_v41 = vld [vmem:[%s5382_s5 + $0x100] sm:$0xff]  }
  0xad   : > { %3952 = vmatpush3.bf16.msra.mxu0 %v4496_v11  ;;  %v4513_v28 = vld [vmem:[%s5382_s5 + $0xb0] sm:$0xff]   ;;  %v4517_v32 = vld [vmem:[%s5382_s5 + $0xb8] sm:$0xff]   ;;  %v4525_v42 = vld [vmem:[%s5382_s5 + $0x180] sm:$0xff]  }
  0xae   : > { %3974 = vmatpush3.bf16.msra.mxu1 %v4497_v12  ;;  %3953 = vmatprep.subr.bf16.mxu0 %v4498_v13  ;;  %v290_v33 = vld [vmem:[%s5374_s8] sm:$0xff]  ;;  %v291_v34 = vld [vmem:[%s5374_s8 + $0x8] sm:$0xff]  ;;  %v292_v7 = vld [vmem:[%s5374_s8 + $0x10] sm:$0xff] }
  0xaf   : > { %3975 = vmatprep.subr.bf16.mxu1 %v4499_v14  ;;  %v3616_v35 = vcombine.low %v290_v33, %v290_v33  ;;  %v3617_v36 = vcombine.high %v290_v33, %v290_v33  ;;  %v3618_v37 = vcombine.low %v291_v34, %v291_v34  ;;  %v3619_v38 = vcombine.high %v291_v34, %v291_v34  ;;  %v4526_v43 = vld [vmem:[%s5382_s5 + $0x148] sm:$0xff]   ;;  %v4530_v47 = vld [vmem:[%s5382_s5 + $0x150] sm:$0xff]   ;;  %v4534_v51 = vld [vmem:[%s5382_s5 + $0x158] sm:$0xff]  }
  0xb0   : > { %v4527_v44 = vld [vmem:[%s5382_s5 + $0x1c8] sm:$0xff]   ;;  %v4531_v48 = vld [vmem:[%s5382_s5 + $0x1d0] sm:$0xff]   ;;  %v4535_v52 = vld [vmem:[%s5382_s5 + $0x1d8] sm:$0xff]   ;;  %v3620_v8 = vcombine.low %v292_v7, %v292_v7  ;;  %v3621_v9 = vcombine.high %v292_v7, %v292_v7 }
  0xb1   : > { %3954 = vmatpush3.bf16.msra.mxu0 %v4500_v15  ;;  %2770 = vmatprep.mubr.bf16.mxu0 %v3617_v36  ;;  %v4528_v45 = vld [vmem:[%s5382_s5 + $0x108] sm:$0xff]   ;;  %v4532_v49 = vld [vmem:[%s5382_s5 + $0x110] sm:$0xff]   ;;  %v4536_v53 = vld [vmem:[%s5382_s5 + $0x118] sm:$0xff]  }
  0xb2   : > { %3976 = vmatpush3.bf16.msra.mxu1 %v4501_v16  ;;  %3955 = vmatprep.subr.bf16.mxu0 %v4502_v17  ;;  %v4529_v46 = vld [vmem:[%s5382_s5 + $0x188] sm:$0xff]   ;;  %v4533_v50 = vld [vmem:[%s5382_s5 + $0x190] sm:$0xff]   ;;  %v4537_v54 = vld [vmem:[%s5382_s5 + $0x198] sm:$0xff]  }
  0xb3   : > { %3977 = vmatprep.subr.bf16.mxu1 %v4503_v18  ;;  %2810 = vmatprep.mubr.bf16.mxu1 %v3619_v38  ;;  %v4538_v55 = vld [vmem:[%s5382_s5 + $0x160] sm:$0xff]   ;;  %v4542_v59 = vld [vmem:[%s5382_s5 + $0x168] sm:$0xff]   ;;  %v4546_v63 = vld [vmem:[%s5382_s5 + $0x170] sm:$0xff]  }
  0xb4   : > { %v4539_v56 = vld [vmem:[%s5382_s5 + $0x1e0] sm:$0xff]   ;;  %v4543_v60 = vld [vmem:[%s5382_s5 + $0x1e8] sm:$0xff]   ;;  %v4547_v0 = vld [vmem:[%s5382_s5 + $0x1f0] sm:$0xff]  }
  0xb5   : > { %3956 = vmatpush3.bf16.msra.mxu0 %v4504_v19  ;;  %v4540_v57 = vld [vmem:[%s5382_s5 + $0x120] sm:$0xff]   ;;  %v4544_v61 = vld [vmem:[%s5382_s5 + $0x128] sm:$0xff]   ;;  %v4548_v1 = vld [vmem:[%s5382_s5 + $0x130] sm:$0xff]  }
  0xb6   : > { %3978 = vmatpush3.bf16.msra.mxu1 %v4505_v20  ;;  %3957 = vmatprep.subr.bf16.mxu0 %v4506_v21  ;;  %v4541_v58 = vld [vmem:[%s5382_s5 + $0x1a0] sm:$0xff]   ;;  %v4545_v62 = vld [vmem:[%s5382_s5 + $0x1a8] sm:$0xff]   ;;  %v4549_v2 = vld [vmem:[%s5382_s5 + $0x1b0] sm:$0xff]  }
  0xb7   : > { %3979 = vmatprep.subr.bf16.mxu1 %v4507_v22  ;;  %v4550_v3 = vld [vmem:[%s5382_s5 + $0x178] sm:$0xff]   ;;  %v4558_v13 = vld [vmem:[%s5382_s5 + $0x240] sm:$0xff]   ;;  %v4562_v17 = vld [vmem:[%s5382_s5 + $0x248] sm:$0xff]  }
  0xb8   : > { %v4551_v4 = vld [vmem:[%s5382_s5 + $0x1f8] sm:$0xff]   ;;  %v4559_v14 = vld [vmem:[%s5382_s5 + $0x2c0] sm:$0xff]   ;;  %v4563_v18 = vld [vmem:[%s5382_s5 + $0x2c8] sm:$0xff]  }
  0xb9   : > { %3958 = vmatpush3.bf16.msra.mxu0 %v4508_v23  ;;  %v4552_v5 = vld [vmem:[%s5382_s5 + $0x138] sm:$0xff]   ;;  %v4560_v15 = vld [vmem:[%s5382_s5 + $0x200] sm:$0xff]   ;;  %v4564_v19 = vld [vmem:[%s5382_s5 + $0x208] sm:$0xff]  }
  0xba   : > { %3980 = vmatpush3.bf16.msra.mxu1 %v4509_v24  ;;  %3959 = vmatprep.subr.bf16.mxu0 %v4510_v25  ;;  %v4553_v6 = vld [vmem:[%s5382_s5 + $0x1b8] sm:$0xff]   ;;  %v4561_v16 = vld [vmem:[%s5382_s5 + $0x280] sm:$0xff]   ;;  %v4565_v20 = vld [vmem:[%s5382_s5 + $0x288] sm:$0xff]  }
  0xbb   : > { %3981 = vmatprep.subr.bf16.mxu1 %v4511_v26  ;;  %v293_v10 = vld [vmem:[%s5374_s8 + $0x18] sm:$0xff]  ;;  %v4566_v21 = vld [vmem:[%s5382_s5 + $0x250] sm:$0xff]  }
  0xbc   : > { %v3622_v11 = vcombine.low %v293_v10, %v293_v10  ;;  %v3623_v12 = vcombine.high %v293_v10, %v293_v10  ;;  %v4567_v22 = vld [vmem:[%s5382_s5 + $0x2d0] sm:$0xff]   ;;  %v4570_v25 = vld [vmem:[%s5382_s5 + $0x258] sm:$0xff]   ;;  %v4578_v33 = vld [vmem:[%s5382_s5 + $0x268] sm:$0xff]  }
  0xbd   : > { %3960 = vmatpush3.bf16.msra.mxu0 %v4512_v27  ;;  %v4568_v23 = vld [vmem:[%s5382_s5 + $0x210] sm:$0xff]   ;;  %v4571_v26 = vld [vmem:[%s5382_s5 + $0x2d8] sm:$0xff]   ;;  %v4579_v34 = vld [vmem:[%s5382_s5 + $0x2e8] sm:$0xff]  }
  0xbe   : > { %3982 = vmatpush3.bf16.msra.mxu1 %v4513_v28  ;;  %3961 = vmatprep.subr.bf16.mxu0 %v4514_v29  ;;  %v4569_v24 = vld [vmem:[%s5382_s5 + $0x290] sm:$0xff]   ;;  %v4572_v27 = vld [vmem:[%s5382_s5 + $0x218] sm:$0xff]   ;;  %v4574_v29 = vld [vmem:[%s5382_s5 + $0x260] sm:$0xff]  }
  0xbf   : > { %3983 = vmatprep.subr.bf16.mxu1 %v4515_v30  ;;  %v4573_v28 = vld [vmem:[%s5382_s5 + $0x298] sm:$0xff]   ;;  %v4575_v30 = vld [vmem:[%s5382_s5 + $0x2e0] sm:$0xff]   ;;  %v4581_v36 = vld [vmem:[%s5382_s5 + $0x2a8] sm:$0xff]  }
  0xc0   : > { %v4583_v38 = vld [vmem:[%s5382_s5 + $0x2f0] sm:$0xff]   ;;  %v4614_v7 = vld [vmem:[%s5382_s5 + $0x368] sm:$0xff]  }
  0xc1   : > { %3962 = vmatpush3.bf16.msra.mxu0 %v4516_v31  ;;  %v4576_v31 = vld [vmem:[%s5382_s5 + $0x220] sm:$0xff]   ;;  %v4617_v10 = vld [vmem:[%s5382_s5 + $0x3a8] sm:$0xff]  }
  0xc2   : > { %3984 = vmatpush3.bf16.msra.mxu1 %v4517_v32  ;;  %3991 = vmatprep.subr.bf16.mxu0 %v4522_v39  ;;  %v4577_v32 = vld [vmem:[%s5382_s5 + $0x2a0] sm:$0xff]   ;;  %v4584_v39 = vld [vmem:[%s5382_s5 + $0x230] sm:$0xff]  }
  0xc3   : > { %4013 = vmatprep.subr.bf16.mxu1 %v4523_v40  ;;  %v4585_v40 = vld [vmem:[%s5382_s5 + $0x2b0] sm:$0xff]  }
  0xc4   : > { %2771 = vmatmul.mubr.bf16.vlgmr.msra.gmra.mrb[0].mxu0 %v3616_v35  ;;  %v4580_v35 = vld [vmem:[%s5382_s5 + $0x228] sm:$0xff]  }
  0xc5   : > { %2811 = vmatmul.mubr.bf16.vlgmr.msra.gmra.mrb[0].mxu1 %v3618_v37  ;;  %3992 = vmatpush3.bf16.msra.mxu0 %v4524_v41  ;;  %v4582_v37 = vld [vmem:[%s5382_s5 + $0x270] sm:$0xff]   ;;  %v4586_v41 = vld [vmem:[%s5382_s5 + $0x278] sm:$0xff]  }
  0xc6   : > { %4014 = vmatpush3.bf16.msra.mxu1 %v4525_v42  ;;  %3993 = vmatprep.subr.bf16.mxu0 %v4526_v43  ;;  %v4587_v42 = vld [vmem:[%s5382_s5 + $0x2f8] sm:$0xff]  }
  0xc7   : > { %4015 = vmatprep.subr.bf16.mxu1 %v4527_v44  ;;  %2850 = vmatprep.mubr.bf16.mxu0 %v3621_v9  ;;  %v4588_v43 = vld [vmem:[%s5382_s5 + $0x238] sm:$0xff]   ;;  %v4616_v9 = vld [vmem:[%s5382_s5 + $0x328] sm:$0xff]  }
  0xc8   : > { %2890 = vmatprep.mubr.bf16.mxu1 %v3623_v12  ;;  %v4589_v44 = vld [vmem:[%s5382_s5 + $0x2b8] sm:$0xff]   ;;  %v4619_v12 = vld [vmem:[%s5382_s5 + $0x3f0] sm:$0xff]  }
  0xc9   : > { %3994 = vmatpush3.bf16.msra.mxu0 %v4528_v45  ;;  %v294_v45 = vld [vmem:[%s5374_s8 + $0x20] sm:$0xff] }
  0xca   : > { %4016 = vmatpush3.bf16.msra.mxu1 %v4529_v46  ;;  %3995 = vmatprep.subr.bf16.mxu0 %v4530_v47  ;;  %v295_v46 = vld [vmem:[%s5374_s8 + $0x28] sm:$0xff]  ;;  %v3624_v47 = vcombine.low %v294_v45, %v294_v45 }
  0xcb   : > { %4017 = vmatprep.subr.bf16.mxu1 %v4531_v48  ;;  %v3625_v48 = vcombine.high %v294_v45, %v294_v45  ;;  %v4650_v45 = vld [vmem:[%s5382_s5 + $0x468] sm:$0xff]  }
  0xcd   : > { %3996 = vmatpush3.bf16.msra.mxu0 %v4532_v49  ;;  %v3626_v49 = vcombine.low %v295_v46, %v295_v46 }
  0xce   : > { %4018 = vmatpush3.bf16.msra.mxu1 %v4533_v50  ;;  %3997 = vmatprep.subr.bf16.mxu0 %v4534_v51  ;;  %v3627_v50 = vcombine.high %v295_v46, %v295_v46  ;;  %v4594_v51 = vld [vmem:[%s5382_s5 + $0x340] sm:$0xff]   ;;  %v4651_v46 = vld [vmem:[%s5382_s5 + $0x4e8] sm:$0xff]  }
  0xcf   : > { %4019 = vmatprep.subr.bf16.mxu1 %v4535_v52  ;;  %v4595_v52 = vld [vmem:[%s5382_s5 + $0x3c0] sm:$0xff]  }
  0xd1   : > { %3998 = vmatpush3.bf16.msra.mxu0 %v4536_v53  ;;  %v4596_v53 = vld [vmem:[%s5382_s5 + $0x300] sm:$0xff]  }
  0xd2   : > { %4020 = vmatpush3.bf16.msra.mxu1 %v4537_v54  ;;  %3999 = vmatprep.subr.bf16.mxu0 %v4538_v55  ;;  %v4597_v54 = vld [vmem:[%s5382_s5 + $0x380] sm:$0xff]   ;;  %v4598_v55 = vld [vmem:[%s5382_s5 + $0x348] sm:$0xff]  }
  0xd3   : > { %4021 = vmatprep.subr.bf16.mxu1 %v4539_v56  ;;  %v4599_v56 = vld [vmem:[%s5382_s5 + $0x3c8] sm:$0xff]  }
  0xd5   : > { %4000 = vmatpush3.bf16.msra.mxu0 %v4540_v57  ;;  %v4600_v57 = vld [vmem:[%s5382_s5 + $0x308] sm:$0xff]  }
  0xd6   : > { %4022 = vmatpush3.bf16.msra.mxu1 %v4541_v58  ;;  %4001 = vmatprep.subr.bf16.mxu0 %v4542_v59  ;;  %v4601_v58 = vld [vmem:[%s5382_s5 + $0x388] sm:$0xff]   ;;  %v4602_v59 = vld [vmem:[%s5382_s5 + $0x350] sm:$0xff]  }
  0xd7   : > { %4023 = vmatprep.subr.bf16.mxu1 %v4543_v60  ;;  %v4603_v60 = vld [vmem:[%s5382_s5 + $0x3d0] sm:$0xff]  }
  0xd9   : > { %4002 = vmatpush3.bf16.msra.mxu0 %v4544_v61  ;;  %v4604_v61 = vld [vmem:[%s5382_s5 + $0x310] sm:$0xff]  }
  0xda   : > { %4024 = vmatpush3.bf16.msra.mxu1 %v4545_v62  ;;  %4003 = vmatprep.subr.bf16.mxu0 %v4546_v63  ;;  %v4605_v62 = vld [vmem:[%s5382_s5 + $0x390] sm:$0xff]   ;;  %v4606_v63 = vld [vmem:[%s5382_s5 + $0x358] sm:$0xff]  }
  0xdb   : > { %4025 = vmatprep.subr.bf16.mxu1 %v4547_v0  ;;  %v4607_v0 = vld [vmem:[%s5382_s5 + $0x3d8] sm:$0xff]  }
  0xdd   : > { %4004 = vmatpush3.bf16.msra.mxu0 %v4548_v1  ;;  %v4608_v1 = vld [vmem:[%s5382_s5 + $0x318] sm:$0xff]  }
  0xde   : > { %4026 = vmatpush3.bf16.msra.mxu1 %v4549_v2  ;;  %4005 = vmatprep.subr.bf16.mxu0 %v4550_v3  ;;  %v4609_v2 = vld [vmem:[%s5382_s5 + $0x398] sm:$0xff]   ;;  %v4610_v3 = vld [vmem:[%s5382_s5 + $0x360] sm:$0xff]  }
  0xdf   : > { %4027 = vmatprep.subr.bf16.mxu1 %v4551_v4  ;;  %v4611_v4 = vld [vmem:[%s5382_s5 + $0x3e0] sm:$0xff]  }
  0xe1   : > { %4006 = vmatpush3.bf16.msra.mxu0 %v4552_v5  ;;  %v4612_v5 = vld [vmem:[%s5382_s5 + $0x320] sm:$0xff]  }
  0xe2   : > { %4028 = vmatpush3.bf16.msra.mxu1 %v4553_v6  ;;  %4035 = vmatprep.subr.bf16.mxu0 %v4558_v13  ;;  %v4613_v6 = vld [vmem:[%s5382_s5 + $0x3a0] sm:$0xff]   ;;  %v4620_v13 = vld [vmem:[%s5382_s5 + $0x330] sm:$0xff]  }
  0xe3   : > { %4057 = vmatprep.subr.bf16.mxu1 %v4559_v14  ;;  %v4621_v14 = vld [vmem:[%s5382_s5 + $0x3b0] sm:$0xff]  }
  0xe4   : > { %2851 = vmatmul.mubr.bf16.vlgmr.msra.gmra.mrb[4].mxu0 %v3620_v8  ;;  %v4615_v8 = vld [vmem:[%s5382_s5 + $0x3e8] sm:$0xff]  }
  0xe5   : > { %2891 = vmatmul.mubr.bf16.vlgmr.msra.gmra.mrb[4].mxu1 %v3622_v11  ;;  %4036 = vmatpush3.bf16.msra.mxu0 %v4560_v15  ;;  %v4618_v11 = vld [vmem:[%s5382_s5 + $0x370] sm:$0xff]   ;;  %v4622_v15 = vld [vmem:[%s5382_s5 + $0x378] sm:$0xff]  }
  0xe6   : > { %4058 = vmatpush3.bf16.msra.mxu1 %v4561_v16  ;;  %4037 = vmatprep.subr.bf16.mxu0 %v4562_v17  ;;  %v4623_v16 = vld [vmem:[%s5382_s5 + $0x3f8] sm:$0xff]  }
  0xe7   : > { %4059 = vmatprep.subr.bf16.mxu1 %v4563_v18  ;;  %2930 = vmatprep.mubr.bf16.mxu0 %v3625_v48  ;;  %v4624_v17 = vld [vmem:[%s5382_s5 + $0x338] sm:$0xff]   ;;  %v4653_v48 = vld [vmem:[%s5382_s5 + $0x4a8] sm:$0xff]  }
  0xe8   : > { %2970 = vmatprep.mubr.bf16.mxu1 %v3627_v50  ;;  %v4625_v18 = vld [vmem:[%s5382_s5 + $0x3b8] sm:$0xff]   ;;  %v4655_v50 = vld [vmem:[%s5382_s5 + $0x4f0] sm:$0xff]  }
  0xe9   : > { %4038 = vmatpush3.bf16.msra.mxu0 %v4564_v19  ;;  %v296_v19 = vld [vmem:[%s5374_s8 + $0x30] sm:$0xff] }
  0xea   : > { %4060 = vmatpush3.bf16.msra.mxu1 %v4565_v20  ;;  %4039 = vmatprep.subr.bf16.mxu0 %v4566_v21  ;;  %v297_v20 = vld [vmem:[%s5374_s8 + $0x38] sm:$0xff]  ;;  %v3628_v21 = vcombine.low %v296_v19, %v296_v19 }
  0xeb   : > { %4061 = vmatprep.subr.bf16.mxu1 %v4567_v22  ;;  %v3629_v22 = vcombine.high %v296_v19, %v296_v19  ;;  %v4686_v19 = vld [vmem:[%s5382_s5 + $0x568] sm:$0xff]  }
  0xed   : > { %4040 = vmatpush3.bf16.msra.mxu0 %v4568_v23  ;;  %v3630_v23 = vcombine.low %v297_v20, %v297_v20 }
  0xee   : > { %4062 = vmatpush3.bf16.msra.mxu1 %v4569_v24  ;;  %4041 = vmatprep.subr.bf16.mxu0 %v4570_v25  ;;  %v4630_v24 = vld [vmem:[%s5382_s5 + $0x440] sm:$0xff]   ;;  %v3631_v25 = vcombine.high %v297_v20, %v297_v20  ;;  %v4687_v20 = vld [vmem:[%s5382_s5 + $0x5e8] sm:$0xff]  }
  0xef   : > { %4063 = vmatprep.subr.bf16.mxu1 %v4571_v26  ;;  %v4631_v26 = vld [vmem:[%s5382_s5 + $0x4c0] sm:$0xff]  }
  0xf1   : > { %4042 = vmatpush3.bf16.msra.mxu0 %v4572_v27  ;;  %v4632_v27 = vld [vmem:[%s5382_s5 + $0x400] sm:$0xff]  }
  0xf2   : > { %4064 = vmatpush3.bf16.msra.mxu1 %v4573_v28  ;;  %4043 = vmatprep.subr.bf16.mxu0 %v4574_v29  ;;  %v4633_v28 = vld [vmem:[%s5382_s5 + $0x480] sm:$0xff]   ;;  %v4634_v29 = vld [vmem:[%s5382_s5 + $0x448] sm:$0xff]  }
  0xf3   : > { %4065 = vmatprep.subr.bf16.mxu1 %v4575_v30  ;;  %v4635_v30 = vld [vmem:[%s5382_s5 + $0x4c8] sm:$0xff]  }
  0xf5   : > { %4044 = vmatpush3.bf16.msra.mxu0 %v4576_v31  ;;  %v4636_v31 = vld [vmem:[%s5382_s5 + $0x408] sm:$0xff]  }
  0xf6   : > { %4066 = vmatpush3.bf16.msra.mxu1 %v4577_v32  ;;  %4045 = vmatprep.subr.bf16.mxu0 %v4578_v33  ;;  %v4637_v32 = vld [vmem:[%s5382_s5 + $0x488] sm:$0xff]   ;;  %v4638_v33 = vld [vmem:[%s5382_s5 + $0x450] sm:$0xff]  }
  0xf7   : > { %4067 = vmatprep.subr.bf16.mxu1 %v4579_v34  ;;  %v4639_v34 = vld [vmem:[%s5382_s5 + $0x4d0] sm:$0xff]  }
  0xf9   : > { %4046 = vmatpush3.bf16.msra.mxu0 %v4580_v35  ;;  %v4640_v35 = vld [vmem:[%s5382_s5 + $0x410] sm:$0xff]  }
  0xfa   : > { %4068 = vmatpush3.bf16.msra.mxu1 %v4581_v36  ;;  %4047 = vmatprep.subr.bf16.mxu0 %v4582_v37  ;;  %v4641_v36 = vld [vmem:[%s5382_s5 + $0x490] sm:$0xff]   ;;  %v4642_v37 = vld [vmem:[%s5382_s5 + $0x458] sm:$0xff]  }
  0xfb   : > { %4069 = vmatprep.subr.bf16.mxu1 %v4583_v38  ;;  %v4643_v38 = vld [vmem:[%s5382_s5 + $0x4d8] sm:$0xff]  }
  0xfd   : > { %4048 = vmatpush3.bf16.msra.mxu0 %v4584_v39  ;;  %v4644_v39 = vld [vmem:[%s5382_s5 + $0x418] sm:$0xff]  }
  0xfe   : > { %4070 = vmatpush3.bf16.msra.mxu1 %v4585_v40  ;;  %4049 = vmatprep.subr.bf16.mxu0 %v4586_v41  ;;  %v4645_v40 = vld [vmem:[%s5382_s5 + $0x498] sm:$0xff]   ;;  %v4646_v41 = vld [vmem:[%s5382_s5 + $0x460] sm:$0xff]  }
  0xff   : > { %4071 = vmatprep.subr.bf16.mxu1 %v4587_v42  ;;  %v4647_v42 = vld [vmem:[%s5382_s5 + $0x4e0] sm:$0xff]  }
 0x101   : > { %4050 = vmatpush3.bf16.msra.mxu0 %v4588_v43  ;;  %v4648_v43 = vld [vmem:[%s5382_s5 + $0x420] sm:$0xff]  }
 0x102   : > { %4072 = vmatpush3.bf16.msra.mxu1 %v4589_v44  ;;  %4079 = vmatprep.subr.bf16.mxu0 %v4594_v51  ;;  %v4649_v44 = vld [vmem:[%s5382_s5 + $0x4a0] sm:$0xff]   ;;  %v4656_v51 = vld [vmem:[%s5382_s5 + $0x430] sm:$0xff]  }
 0x103   : > { %4101 = vmatprep.subr.bf16.mxu1 %v4595_v52  ;;  %v4657_v52 = vld [vmem:[%s5382_s5 + $0x4b0] sm:$0xff]  }
 0x104   : > { %2931 = vmatmul.mubr.bf16.vlgmr.msra.gmra.mrb[8].mxu0 %v3624_v47  ;;  %v4652_v47 = vld [vmem:[%s5382_s5 + $0x428] sm:$0xff]  }
 0x105   : > { %2971 = vmatmul.mubr.bf16.vlgmr.msra.gmra.mrb[8].mxu1 %v3626_v49  ;;  %4080 = vmatpush3.bf16.msra.mxu0 %v4596_v53  ;;  %v4654_v49 = vld [vmem:[%s5382_s5 + $0x470] sm:$0xff]   ;;  %v4658_v53 = vld [vmem:[%s5382_s5 + $0x478] sm:$0xff]  }
 0x106   : > { %4102 = vmatpush3.bf16.msra.mxu1 %v4597_v54  ;;  %4081 = vmatprep.subr.bf16.mxu0 %v4598_v55  ;;  %v4659_v54 = vld [vmem:[%s5382_s5 + $0x4f8] sm:$0xff]  }
 0x107   : > { %4103 = vmatprep.subr.bf16.mxu1 %v4599_v56  ;;  %3010 = vmatprep.mubr.bf16.mxu0 %v3629_v22  ;;  %v4660_v55 = vld [vmem:[%s5382_s5 + $0x438] sm:$0xff]   ;;  %v4689_v22 = vld [vmem:[%s5382_s5 + $0x5a8] sm:$0xff]  }
 0x108   : > { %3050 = vmatprep.mubr.bf16.mxu1 %v3631_v25  ;;  %v4661_v56 = vld [vmem:[%s5382_s5 + $0x4b8] sm:$0xff]   ;;  %v4692_v25 = vld [vmem:[%s5382_s5 + $0x530] sm:$0xff]  }
 0x109   : > { %4082 = vmatpush3.bf16.msra.mxu0 %v4600_v57  ;;  %v298_v57 = vld [vmem:[%s5374_s8 + $0x40] sm:$0xff] }
 0x10a   : > { %4104 = vmatpush3.bf16.msra.mxu1 %v4601_v58  ;;  %4083 = vmatprep.subr.bf16.mxu0 %v4602_v59  ;;  %v3632_v58 = vcombine.low %v298_v57, %v298_v57  ;;  %v3633_v59 = vcombine.high %v298_v57, %v298_v57  ;;  %v4722_v57 = vld [vmem:[%s5382_s5 + $0x668] sm:$0xff]  }
 0x10b   : > { %4105 = vmatprep.subr.bf16.mxu1 %v4603_v60  ;;  %v299_v60 = vld [vmem:[%s5374_s8 + $0x48] sm:$0xff] }
 0x10d   : > { %4084 = vmatpush3.bf16.msra.mxu0 %v4604_v61  ;;  %v3634_v61 = vcombine.low %v299_v60, %v299_v60 }
 0x10e   : > { %4106 = vmatpush3.bf16.msra.mxu1 %v4605_v62  ;;  %4085 = vmatprep.subr.bf16.mxu0 %v4606_v63  ;;  %v3635_v62 = vcombine.high %v299_v60, %v299_v60  ;;  %v4666_v63 = vld [vmem:[%s5382_s5 + $0x540] sm:$0xff]   ;;  %v4725_v60 = vld [vmem:[%s5382_s5 + $0x6a8] sm:$0xff]  }
 0x10f   : > { %4107 = vmatprep.subr.bf16.mxu1 %v4607_v0  ;;  %v4667_v0 = vld [vmem:[%s5382_s5 + $0x5c0] sm:$0xff]  }
 0x111   : > { %4086 = vmatpush3.bf16.msra.mxu0 %v4608_v1  ;;  %v4668_v1 = vld [vmem:[%s5382_s5 + $0x500] sm:$0xff]  }
 0x112   : > { %4108 = vmatpush3.bf16.msra.mxu1 %v4609_v2  ;;  %4087 = vmatprep.subr.bf16.mxu0 %v4610_v3  ;;  %v4669_v2 = vld [vmem:[%s5382_s5 + $0x580] sm:$0xff]   ;;  %v4670_v3 = vld [vmem:[%s5382_s5 + $0x548] sm:$0xff]  }
 0x113   : > { %4109 = vmatprep.subr.bf16.mxu1 %v4611_v4  ;;  %v4671_v4 = vld [vmem:[%s5382_s5 + $0x5c8] sm:$0xff]  }
 0x115   : > { %4088 = vmatpush3.bf16.msra.mxu0 %v4612_v5  ;;  %v4672_v5 = vld [vmem:[%s5382_s5 + $0x508] sm:$0xff]  }
 0x116   : > { %4110 = vmatpush3.bf16.msra.mxu1 %v4613_v6  ;;  %4089 = vmatprep.subr.bf16.mxu0 %v4614_v7  ;;  %v4673_v6 = vld [vmem:[%s5382_s5 + $0x588] sm:$0xff]   ;;  %v4674_v7 = vld [vmem:[%s5382_s5 + $0x550] sm:$0xff]  }
 0x117   : > { %4111 = vmatprep.subr.bf16.mxu1 %v4615_v8  ;;  %v4675_v8 = vld [vmem:[%s5382_s5 + $0x5d0] sm:$0xff]  }
 0x119   : > { %4090 = vmatpush3.bf16.msra.mxu0 %v4616_v9  ;;  %v4676_v9 = vld [vmem:[%s5382_s5 + $0x510] sm:$0xff]  }
 0x11a   : > { %4112 = vmatpush3.bf16.msra.mxu1 %v4617_v10  ;;  %4091 = vmatprep.subr.bf16.mxu0 %v4618_v11  ;;  %v4677_v10 = vld [vmem:[%s5382_s5 + $0x590] sm:$0xff]   ;;  %v4678_v11 = vld [vmem:[%s5382_s5 + $0x558] sm:$0xff]  }
 0x11b   : > { %4113 = vmatprep.subr.bf16.mxu1 %v4619_v12  ;;  %v4679_v12 = vld [vmem:[%s5382_s5 + $0x5d8] sm:$0xff]  }
 0x11d   : > { %4092 = vmatpush3.bf16.msra.mxu0 %v4620_v13  ;;  %v4680_v13 = vld [vmem:[%s5382_s5 + $0x518] sm:$0xff]  }
 0x11e   : > { %4114 = vmatpush3.bf16.msra.mxu1 %v4621_v14  ;;  %4093 = vmatprep.subr.bf16.mxu0 %v4622_v15  ;;  %v4681_v14 = vld [vmem:[%s5382_s5 + $0x598] sm:$0xff]   ;;  %v4682_v15 = vld [vmem:[%s5382_s5 + $0x560] sm:$0xff]  }
 0x11f   : > { %4115 = vmatprep.subr.bf16.mxu1 %v4623_v16  ;;  %v4683_v16 = vld [vmem:[%s5382_s5 + $0x5e0] sm:$0xff]  }
 0x121   : > { %4094 = vmatpush3.bf16.msra.mxu0 %v4624_v17  ;;  %v4684_v17 = vld [vmem:[%s5382_s5 + $0x520] sm:$0xff]  }
 0x122   : > { %4116 = vmatpush3.bf16.msra.mxu1 %v4625_v18  ;;  %4123 = vmatprep.subr.bf16.mxu0 %v4630_v24  ;;  %v4685_v18 = vld [vmem:[%s5382_s5 + $0x5a0] sm:$0xff]   ;;  %v4691_v24 = vld [vmem:[%s5382_s5 + $0x5f0] sm:$0xff]  }
 0x123   : > { %4145 = vmatprep.subr.bf16.mxu1 %v4631_v26  ;;  %v4693_v26 = vld [vmem:[%s5382_s5 + $0x5b0] sm:$0xff]  }
 0x124   : > { %3011 = vmatmul.mubr.bf16.vlgmr.msra.gmra.mrb[12].mxu0 %v3628_v21  ;;  %v4688_v21 = vld [vmem:[%s5382_s5 + $0x528] sm:$0xff]  }
 0x125   : > { %3051 = vmatmul.mubr.bf16.vlgmr.msra.gmra.mrb[12].mxu1 %v3630_v23  ;;  %4124 = vmatpush3.bf16.msra.mxu0 %v4632_v27  ;;  %v4690_v23 = vld [vmem:[%s5382_s5 + $0x570] sm:$0xff]   ;;  %v4694_v27 = vld [vmem:[%s5382_s5 + $0x578] sm:$0xff]  }
 0x126   : > { %4146 = vmatpush3.bf16.msra.mxu1 %v4633_v28  ;;  %4125 = vmatprep.subr.bf16.mxu0 %v4634_v29  ;;  %v4695_v28 = vld [vmem:[%s5382_s5 + $0x5f8] sm:$0xff]  }
 0x127   : > { %4147 = vmatprep.subr.bf16.mxu1 %v4635_v30  ;;  %3090 = vmatprep.mubr.bf16.mxu0 %v3633_v59  ;;  %v4696_v29 = vld [vmem:[%s5382_s5 + $0x538] sm:$0xff]   ;;  %v4724_v59 = vld [vmem:[%s5382_s5 + $0x628] sm:$0xff]  }
 0x128   : > { %3130 = vmatprep.mubr.bf16.mxu1 %v3635_v62  ;;  %v4697_v30 = vld [vmem:[%s5382_s5 + $0x5b8] sm:$0xff]   ;;  %v4727_v62 = vld [vmem:[%s5382_s5 + $0x6f0] sm:$0xff]  }
 0x129   : > { %4126 = vmatpush3.bf16.msra.mxu0 %v4636_v31  ;;  %v300_v31 = vld [vmem:[%s5374_s8 + $0x50] sm:$0xff] }
 0x12a   : > { %4148 = vmatpush3.bf16.msra.mxu1 %v4637_v32  ;;  %4127 = vmatprep.subr.bf16.mxu0 %v4638_v33  ;;  %v301_v32 = vld [vmem:[%s5374_s8 + $0x58] sm:$0xff]  ;;  %v3636_v33 = vcombine.low %v300_v31, %v300_v31 }
 0x12b   : > { %4149 = vmatprep.subr.bf16.mxu1 %v4639_v34  ;;  %v3637_v34 = vcombine.high %v300_v31, %v300_v31  ;;  %v4757_v31 = vld [vmem:[%s5382_s5 + $0x7a0] sm:$0xff]  }
 0x12d   : > { %4128 = vmatpush3.bf16.msra.mxu0 %v4640_v35  ;;  %v3638_v35 = vcombine.low %v301_v32, %v301_v32 }
 0x12e   : > { %4150 = vmatpush3.bf16.msra.mxu1 %v4641_v36  ;;  %4129 = vmatprep.subr.bf16.mxu0 %v4642_v37  ;;  %v3639_v36 = vcombine.high %v301_v32, %v301_v32  ;;  %v4702_v37 = vld [vmem:[%s5382_s5 + $0x640] sm:$0xff]  }
 0x12f   : > { %4151 = vmatprep.subr.bf16.mxu1 %v4643_v38  ;;  %v4703_v38 = vld [vmem:[%s5382_s5 + $0x6c0] sm:$0xff]  }
 0x131   : > { %4130 = vmatpush3.bf16.msra.mxu0 %v4644_v39  ;;  %v4704_v39 = vld [vmem:[%s5382_s5 + $0x600] sm:$0xff]  }
 0x132   : > { %4152 = vmatpush3.bf16.msra.mxu1 %v4645_v40  ;;  %4131 = vmatprep.subr.bf16.mxu0 %v4646_v41  ;;  %v4705_v40 = vld [vmem:[%s5382_s5 + $0x680] sm:$0xff]   ;;  %v4706_v41 = vld [vmem:[%s5382_s5 + $0x648] sm:$0xff]  }
 0x133   : > { %4153 = vmatprep.subr.bf16.mxu1 %v4647_v42  ;;  %v4707_v42 = vld [vmem:[%s5382_s5 + $0x6c8] sm:$0xff]  }
 0x135   : > { %4132 = vmatpush3.bf16.msra.mxu0 %v4648_v43  ;;  %v4708_v43 = vld [vmem:[%s5382_s5 + $0x608] sm:$0xff]  }
 0x136   : > { %4154 = vmatpush3.bf16.msra.mxu1 %v4649_v44  ;;  %4133 = vmatprep.subr.bf16.mxu0 %v4650_v45  ;;  %v4709_v44 = vld [vmem:[%s5382_s5 + $0x688] sm:$0xff]   ;;  %v4710_v45 = vld [vmem:[%s5382_s5 + $0x650] sm:$0xff]  }
 0x137   : > { %4155 = vmatprep.subr.bf16.mxu1 %v4651_v46  ;;  %v4711_v46 = vld [vmem:[%s5382_s5 + $0x6d0] sm:$0xff]  }
 0x139   : > { %4134 = vmatpush3.bf16.msra.mxu0 %v4652_v47  ;;  %v4712_v47 = vld [vmem:[%s5382_s5 + $0x610] sm:$0xff]  }
 0x13a   : > { %4156 = vmatpush3.bf16.msra.mxu1 %v4653_v48  ;;  %4135 = vmatprep.subr.bf16.mxu0 %v4654_v49  ;;  %v4713_v48 = vld [vmem:[%s5382_s5 + $0x690] sm:$0xff]   ;;  %v4714_v49 = vld [vmem:[%s5382_s5 + $0x658] sm:$0xff]  }
 0x13b   : > { %4157 = vmatprep.subr.bf16.mxu1 %v4655_v50  ;;  %v4715_v50 = vld [vmem:[%s5382_s5 + $0x6d8] sm:$0xff]  }
 0x13d   : > { %4136 = vmatpush3.bf16.msra.mxu0 %v4656_v51  ;;  %v4716_v51 = vld [vmem:[%s5382_s5 + $0x618] sm:$0xff]  }
 0x13e   : > { %4158 = vmatpush3.bf16.msra.mxu1 %v4657_v52  ;;  %4137 = vmatprep.subr.bf16.mxu0 %v4658_v53  ;;  %v4717_v52 = vld [vmem:[%s5382_s5 + $0x698] sm:$0xff]   ;;  %v4718_v53 = vld [vmem:[%s5382_s5 + $0x660] sm:$0xff]  }
 0x13f   : > { %4159 = vmatprep.subr.bf16.mxu1 %v4659_v54  ;;  %v4719_v54 = vld [vmem:[%s5382_s5 + $0x6e0] sm:$0xff]  }
 0x141   : > { %4138 = vmatpush3.bf16.msra.mxu0 %v4660_v55  ;;  %v4720_v55 = vld [vmem:[%s5382_s5 + $0x620] sm:$0xff]  }
 0x142   : > { %4160 = vmatpush3.bf16.msra.mxu1 %v4661_v56  ;;  %4167 = vmatprep.subr.bf16.mxu0 %v4666_v63  ;;  %v4721_v56 = vld [vmem:[%s5382_s5 + $0x6a0] sm:$0xff]   ;;  %v4728_v63 = vld [vmem:[%s5382_s5 + $0x630] sm:$0xff]  }
 0x143   : > { %4189 = vmatprep.subr.bf16.mxu1 %v4667_v0  ;;  %v4729_v0 = vld [vmem:[%s5382_s5 + $0x6b0] sm:$0xff]  }
 0x144   : > { %3091 = vmatmul.mubr.bf16.vlgmr.msra.gmra.mrb[16].mxu0 %v3632_v58  ;;  %v4723_v58 = vld [vmem:[%s5382_s5 + $0x6e8] sm:$0xff]  }
 0x145   : > { %3131 = vmatmul.mubr.bf16.vlgmr.msra.gmra.mrb[16].mxu1 %v3634_v61  ;;  %4168 = vmatpush3.bf16.msra.mxu0 %v4668_v1  ;;  %v4726_v61 = vld [vmem:[%s5382_s5 + $0x670] sm:$0xff]   ;;  %v4730_v1 = vld [vmem:[%s5382_s5 + $0x678] sm:$0xff]  }
 0x146   : > { %4190 = vmatpush3.bf16.msra.mxu1 %v4669_v2  ;;  %4169 = vmatprep.subr.bf16.mxu0 %v4670_v3  ;;  %v4731_v2 = vld [vmem:[%s5382_s5 + $0x6f8] sm:$0xff]  }
 0x147   : > { %4191 = vmatprep.subr.bf16.mxu1 %v4671_v4  ;;  %3170 = vmatprep.mubr.bf16.mxu0 %v3637_v34  ;;  %v4732_v3 = vld [vmem:[%s5382_s5 + $0x638] sm:$0xff]   ;;  %v4758_v34 = vld [vmem:[%s5382_s5 + $0x768] sm:$0xff]  }
 0x148   : > { %3210 = vmatprep.mubr.bf16.mxu1 %v3639_v36  ;;  %v4733_v4 = vld [vmem:[%s5382_s5 + $0x6b8] sm:$0xff]  }
 0x149   : > { %4170 = vmatpush3.bf16.msra.mxu0 %v4672_v5  ;;  %v302_v5 = vld [vmem:[%s5374_s8 + $0x60] sm:$0xff] }
 0x14a   : > { %4192 = vmatpush3.bf16.msra.mxu1 %v4673_v6  ;;  %4171 = vmatprep.subr.bf16.mxu0 %v4674_v7  ;;  %v303_v6 = vld [vmem:[%s5374_s8 + $0x68] sm:$0xff]  ;;  %v3640_v7 = vcombine.low %v302_v5, %v302_v5 }
 0x14b   : > { %4193 = vmatprep.subr.bf16.mxu1 %v4675_v8  ;;  %v3641_v8 = vcombine.high %v302_v5, %v302_v5  ;;  %v4783_v5 = vld [vmem:[%s5382_s5 + $0x8d0] sm:$0xff]  }
 0x14d   : > { %4172 = vmatpush3.bf16.msra.mxu0 %v4676_v9  ;;  %v3642_v9 = vcombine.low %v303_v6, %v303_v6 }
 0x14e   : > { %4194 = vmatpush3.bf16.msra.mxu1 %v4677_v10  ;;  %4173 = vmatprep.subr.bf16.mxu0 %v4678_v11  ;;  %v4738_v10 = vld [vmem:[%s5382_s5 + $0x740] sm:$0xff]   ;;  %v3643_v11 = vcombine.high %v303_v6, %v303_v6  ;;  %v4784_v6 = vld [vmem:[%s5382_s5 + $0x810] sm:$0xff]  }
 0x14f   : > { %4195 = vmatprep.subr.bf16.mxu1 %v4679_v12  ;;  %v4739_v12 = vld [vmem:[%s5382_s5 + $0x7c0] sm:$0xff]  }
 0x151   : > { %4174 = vmatpush3.bf16.msra.mxu0 %v4680_v13  ;;  %v4740_v13 = vld [vmem:[%s5382_s5 + $0x700] sm:$0xff]  }
 0x152   : > { %4196 = vmatpush3.bf16.msra.mxu1 %v4681_v14  ;;  %4175 = vmatprep.subr.bf16.mxu0 %v4682_v15  ;;  %v4741_v14 = vld [vmem:[%s5382_s5 + $0x780] sm:$0xff]   ;;  %v4742_v15 = vld [vmem:[%s5382_s5 + $0x748] sm:$0xff]  }
 0x153   : > { %4197 = vmatprep.subr.bf16.mxu1 %v4683_v16  ;;  %v4743_v16 = vld [vmem:[%s5382_s5 + $0x7c8] sm:$0xff]  }
 0x155   : > { %4176 = vmatpush3.bf16.msra.mxu0 %v4684_v17  ;;  %v4744_v17 = vld [vmem:[%s5382_s5 + $0x708] sm:$0xff]  }
 0x156   : > { %4198 = vmatpush3.bf16.msra.mxu1 %v4685_v18  ;;  %4177 = vmatprep.subr.bf16.mxu0 %v4686_v19  ;;  %v4745_v18 = vld [vmem:[%s5382_s5 + $0x788] sm:$0xff]   ;;  %v4746_v19 = vld [vmem:[%s5382_s5 + $0x750] sm:$0xff]  }
 0x157   : > { %4199 = vmatprep.subr.bf16.mxu1 %v4687_v20  ;;  %v4747_v20 = vld [vmem:[%s5382_s5 + $0x7d0] sm:$0xff]  }
 0x159   : > { %4178 = vmatpush3.bf16.msra.mxu0 %v4688_v21  ;;  %v4748_v21 = vld [vmem:[%s5382_s5 + $0x710] sm:$0xff]  }
 0x15a   : > { %4200 = vmatpush3.bf16.msra.mxu1 %v4689_v22  ;;  %4179 = vmatprep.subr.bf16.mxu0 %v4690_v23  ;;  %v4749_v22 = vld [vmem:[%s5382_s5 + $0x790] sm:$0xff]   ;;  %v4750_v23 = vld [vmem:[%s5382_s5 + $0x758] sm:$0xff]  }
 0x15b   : > { %4201 = vmatprep.subr.bf16.mxu1 %v4691_v24  ;;  %v4751_v24 = vld [vmem:[%s5382_s5 + $0x7d8] sm:$0xff]  }
 0x15d   : > { %4180 = vmatpush3.bf16.msra.mxu0 %v4692_v25  ;;  %v4752_v25 = vld [vmem:[%s5382_s5 + $0x718] sm:$0xff]  }
 0x15e   : > { %4202 = vmatpush3.bf16.msra.mxu1 %v4693_v26  ;;  %4181 = vmatprep.subr.bf16.mxu0 %v4694_v27  ;;  %v4753_v26 = vld [vmem:[%s5382_s5 + $0x798] sm:$0xff]   ;;  %v4754_v27 = vld [vmem:[%s5382_s5 + $0x760] sm:$0xff]  }
 0x15f   : > { %4203 = vmatprep.subr.bf16.mxu1 %v4695_v28  ;;  %v4755_v28 = vld [vmem:[%s5382_s5 + $0x7e0] sm:$0xff]  }
 0x161   : > { %4182 = vmatpush3.bf16.msra.mxu0 %v4696_v29  ;;  %v4756_v29 = vld [vmem:[%s5382_s5 + $0x720] sm:$0xff]  }
 0x162   : > { %4204 = vmatpush3.bf16.msra.mxu1 %v4697_v30  ;;  %4211 = vmatprep.subr.bf16.mxu0 %v4702_v37  ;;  %v4759_v37 = vld [vmem:[%s5382_s5 + $0x7e8] sm:$0xff]  }
 0x163   : > { %4233 = vmatprep.subr.bf16.mxu1 %v4703_v38 }
 0x164   : > { %3171 = vmatmul.mubr.bf16.vlgmr.msra.gmra.mrb[20].mxu0 %v3636_v33 }
 0x165   : > { %3211 = vmatmul.mubr.bf16.vlgmr.msra.gmra.mrb[20].mxu1 %v3638_v35  ;;  %4212 = vmatpush3.bf16.msra.mxu0 %v4704_v39 }
 0x166   : > { %4234 = vmatpush3.bf16.msra.mxu1 %v4705_v40  ;;  %4213 = vmatprep.subr.bf16.mxu0 %v4706_v41  ;;  %v4760_v41 = vld [vmem:[%s5382_s5 + $0x728] sm:$0xff]  }
 0x167   : > { %4235 = vmatprep.subr.bf16.mxu1 %v4707_v42  ;;  %3250 = vmatprep.mubr.bf16.mxu0 %v3641_v8  ;;  %v4786_v8 = vld [vmem:[%s5382_s5 + $0x858] sm:$0xff]  }
 0x168   : > { %3290 = vmatprep.mubr.bf16.mxu1 %v3643_v11  ;;  %v4789_v11 = vld [vmem:[%s5382_s5 + $0x898] sm:$0xff]  }
 0x169   : > { %4214 = vmatpush3.bf16.msra.mxu0 %v4708_v43 }
 0x16a   : > { %4236 = vmatpush3.bf16.msra.mxu1 %v4709_v44  ;;  %4215 = vmatprep.subr.bf16.mxu0 %v4710_v45  ;;  %v4761_v44 = vld [vmem:[%s5382_s5 + $0x7a8] sm:$0xff]  }
 0x16b   : > { %4237 = vmatprep.subr.bf16.mxu1 %v4711_v46  ;;  %v4762_v46 = vld [vmem:[%s5382_s5 + $0x770] sm:$0xff]  }
 0x16d   : > { %4216 = vmatpush3.bf16.msra.mxu0 %v4712_v47  ;;  %v4763_v47 = vld [vmem:[%s5382_s5 + $0x7f0] sm:$0xff]  }
 0x16e   : > { %4238 = vmatpush3.bf16.msra.mxu1 %v4713_v48  ;;  %4217 = vmatprep.subr.bf16.mxu0 %v4714_v49  ;;  %v4764_v48 = vld [vmem:[%s5382_s5 + $0x730] sm:$0xff]  }
 0x16f   : > { %4239 = vmatprep.subr.bf16.mxu1 %v4715_v50  ;;  %v4765_v49 = vld [vmem:[%s5382_s5 + $0x7b0] sm:$0xff]   ;;  %v4766_v50 = vld [vmem:[%s5382_s5 + $0x778] sm:$0xff]  }
 0x171   : > { %4218 = vmatpush3.bf16.msra.mxu0 %v4716_v51  ;;  %v4767_v51 = vld [vmem:[%s5382_s5 + $0x7f8] sm:$0xff]  }
 0x172   : > { %4240 = vmatpush3.bf16.msra.mxu1 %v4717_v52  ;;  %4219 = vmatprep.subr.bf16.mxu0 %v4718_v53  ;;  %v4768_v52 = vld [vmem:[%s5382_s5 + $0x738] sm:$0xff]  }
 0x173   : > { %4241 = vmatprep.subr.bf16.mxu1 %v4719_v54  ;;  %v4769_v53 = vld [vmem:[%s5382_s5 + $0x7b8] sm:$0xff]   ;;  %v304_v54 = vld [vmem:[%s5374_s8 + $0x70] sm:$0xff] }
 0x175   : > { %4220 = vmatpush3.bf16.msra.mxu0 %v4720_v55  ;;  %v305_v55 = vld [vmem:[%s5374_s8 + $0x78] sm:$0xff] }
 0x176   : > { %4242 = vmatpush3.bf16.msra.mxu1 %v4721_v56  ;;  %4221 = vmatprep.subr.bf16.mxu0 %v4722_v57  ;;  %v3644_v56 = vcombine.low %v304_v54, %v304_v54  ;;  %v3645_v57 = vcombine.high %v304_v54, %v304_v54 }
 0x177   : > { %4243 = vmatprep.subr.bf16.mxu1 %v4723_v58  ;;  %v3646_v58 = vcombine.low %v305_v55, %v305_v55 }
 0x179   : > { %4222 = vmatpush3.bf16.msra.mxu0 %v4724_v59  ;;  %v4774_v59 = vld [vmem:[%s5382_s5 + $0x840] sm:$0xff]  }
 0x17a   : > { %4244 = vmatpush3.bf16.msra.mxu1 %v4725_v60  ;;  %4223 = vmatprep.subr.bf16.mxu0 %v4726_v61  ;;  %v3647_v60 = vcombine.high %v305_v55, %v305_v55  ;;  %v4775_v61 = vld [vmem:[%s5382_s5 + $0x8c0] sm:$0xff]  }
 0x17b   : > { %4245 = vmatprep.subr.bf16.mxu1 %v4727_v62  ;;  %v4776_v62 = vld [vmem:[%s5382_s5 + $0x800] sm:$0xff]  }
 0x17d   : > { %4224 = vmatpush3.bf16.msra.mxu0 %v4728_v63  ;;  %v4777_v63 = vld [vmem:[%s5382_s5 + $0x880] sm:$0xff]  }
 0x17e   : > { %4246 = vmatpush3.bf16.msra.mxu1 %v4729_v0  ;;  %4225 = vmatprep.subr.bf16.mxu0 %v4730_v1  ;;  %v4778_v0 = vld [vmem:[%s5382_s5 + $0x848] sm:$0xff]  }
 0x17f   : > { %4247 = vmatprep.subr.bf16.mxu1 %v4731_v2  ;;  %v4779_v1 = vld [vmem:[%s5382_s5 + $0x8c8] sm:$0xff]  }
 0x180   : > { %v4780_v2 = vld [vmem:[%s5382_s5 + $0x808] sm:$0xff]  }
 0x181   : > { %4226 = vmatpush3.bf16.msra.mxu0 %v4732_v3  ;;  %v4781_v3 = vld [vmem:[%s5382_s5 + $0x888] sm:$0xff]  }
 0x182   : > { %4248 = vmatpush3.bf16.msra.mxu1 %v4733_v4  ;;  %4255 = vmatprep.subr.bf16.mxu0 %v4738_v10  ;;  %v4782_v4 = vld [vmem:[%s5382_s5 + $0x850] sm:$0xff]   ;;  %v4788_v10 = vld [vmem:[%s5382_s5 + $0x818] sm:$0xff]  }
 0x183   : > { %4277 = vmatprep.subr.bf16.mxu1 %v4739_v12  ;;  %v4790_v12 = vld [vmem:[%s5382_s5 + $0x860] sm:$0xff]  }
 0x184   : > { %3251 = vmatmul.mubr.bf16.vlgmr.msra.gmra.mrb[24].mxu0 %v3640_v7  ;;  %v4785_v7 = vld [vmem:[%s5382_s5 + $0x890] sm:$0xff]  }
 0x185   : > { %3291 = vmatmul.mubr.bf16.vlgmr.msra.gmra.mrb[24].mxu1 %v3642_v9  ;;  %4256 = vmatpush3.bf16.msra.mxu0 %v4740_v13  ;;  %v4787_v9 = vld [vmem:[%s5382_s5 + $0x8d8] sm:$0xff]   ;;  %v4791_v13 = vld [vmem:[%s5382_s5 + $0x8e0] sm:$0xff]  }
 0x186   : > { %4278 = vmatpush3.bf16.msra.mxu1 %v4741_v14  ;;  %4257 = vmatprep.subr.bf16.mxu0 %v4742_v15  ;;  %v4792_v14 = vld [vmem:[%s5382_s5 + $0x820] sm:$0xff]  }
 0x187   : > { %4279 = vmatprep.subr.bf16.mxu1 %v4743_v16  ;;  %3330 = vmatprep.mubr.bf16.mxu0 %v3645_v57  ;;  %v4793_v16 = vld [vmem:[%s5382_s5 + $0x8a0] sm:$0xff]  }
 0x188   : > { %3370 = vmatprep.mubr.bf16.mxu1 %v3647_v60 }
 0x189   : > { %4258 = vmatpush3.bf16.msra.mxu0 %v4744_v17 }
 0x18a   : > { %4280 = vmatpush3.bf16.msra.mxu1 %v4745_v18  ;;  %4259 = vmatprep.subr.bf16.mxu0 %v4746_v19  ;;  %v4794_v19 = vld [vmem:[%s5382_s5 + $0x868] sm:$0xff]  }
 0x18b   : > { %4281 = vmatprep.subr.bf16.mxu1 %v4747_v20 }
 0x18d   : > { %4260 = vmatpush3.bf16.msra.mxu0 %v4748_v21 }
 0x18e   : > { %4282 = vmatpush3.bf16.msra.mxu1 %v4749_v22  ;;  %4261 = vmatprep.subr.bf16.mxu0 %v4750_v23  ;;  %v4795_v22 = vld [vmem:[%s5382_s5 + $0x8e8] sm:$0xff]  }
 0x18f   : > { %4283 = vmatprep.subr.bf16.mxu1 %v4751_v24 }
 0x191   : > { %4262 = vmatpush3.bf16.msra.mxu0 %v4752_v25 }
 0x192   : > { %4284 = vmatpush3.bf16.msra.mxu1 %v4753_v26  ;;  %4263 = vmatprep.subr.bf16.mxu0 %v4754_v27  ;;  %v4796_v27 = vld [vmem:[%s5382_s5 + $0x828] sm:$0xff]  }
 0x193   : > { %4285 = vmatprep.subr.bf16.mxu1 %v4755_v28 }
 0x195   : > { %4264 = vmatpush3.bf16.msra.mxu0 %v4756_v29  ;;  %v4797_v29 = vld [vmem:[%s5382_s5 + $0x8a8] sm:$0xff]  }
 0x196   : > { %4286 = vmatpush3.bf16.msra.mxu1 %v4757_v31  ;;  %4265 = vmatprep.subr.bf16.mxu0 %v4758_v34  ;;  %v4800_v34 = vld [vmem:[%s5382_s5 + $0x830] sm:$0xff]  }
 0x197   : > { %v3963_v30 = vpop.f32.mrb[0].mxu0  ;;  %4287 = vmatprep.subr.bf16.mxu1 %v4759_v37  ;;  %v4803_v37 = vld [vmem:[%s5382_s5 + $0x8f8] sm:$0xff]  }
 0x198   : > { %v3985_v32 = vpop.f32.mrb[0].mxu1  ;;  %v3964_v33 = vpop.f32.mrb[1].mxu0 }
 0x199   : > { %v3965_v35 = vadd.f32 %v3964_v33, %v3963_v30  ;;  %v3986_v36 = vpop.f32.mrb[1].mxu1  ;;  %v3966_v39 = vpop.f32.mrb[2].mxu0  ;;  %4266 = vmatpush3.bf16.msra.mxu0 %v4760_v41  ;;  %v4799_v33 = vld [vmem:[%s5382_s5 + $0x8f0] sm:$0xff]   ;;  %v307_v41 = vld [vmem:[%s5374_s8 + $0x88] sm:$0xff] }
 0x19a   : > { %v3987_v38 = vadd.f32 %v3986_v36, %v3985_v32  ;;  %v3988_v40 = vpop.f32.mrb[2].mxu1  ;;  %v3967_v42 = vpop.f32.mrb[3].mxu0  ;;  %4288 = vmatpush3.bf16.msra.mxu1 %v4761_v44  ;;  %4267 = vmatprep.subr.bf16.mxu0 %v4762_v46  ;;  %v4798_v32 = vld [vmem:[%s5382_s5 + $0x870] sm:$0xff]   ;;  %v4802_v36 = vld [vmem:[%s5382_s5 + $0x878] sm:$0xff]   ;;  %v3650_v44 = vcombine.low %v307_v41, %v307_v41 }
 0x19b   : > { %v3989_v45 = vpop.f32.mrb[3].mxu1  ;;  %4289 = vmatprep.subr.bf16.mxu1 %v4763_v47  ;;  %v4805_v39 = vld [vmem:[%s5382_s5 + $0x8b8] sm:$0xff]   ;;  %v306_v40 = vld [vmem:[%s5374_s8 + $0x80] sm:$0xff] }
 0x19c   : > { %v5661_v43 = vadd.f32 %v3987_v38, %v3965_v35  ;;  %v4801_v35 = vld [vmem:[%s5382_s5 + $0x8b0] sm:$0xff]   ;;  %v4804_v38 = vld [vmem:[%s5382_s5 + $0x838] sm:$0xff]   ;;  %v3648_v42 = vcombine.low %v306_v40, %v306_v40  ;;  %v3651_v45 = vcombine.high %v307_v41, %v307_v41 }
 0x19d   : > { %4268 = vmatpush3.bf16.msra.mxu0 %v4764_v48 }
 0x19e   : > { %4290 = vmatpush3.bf16.msra.mxu1 %v4765_v49  ;;  %4269 = vmatprep.subr.bf16.mxu0 %v4766_v50 }
 0x19f   : > { %4291 = vmatprep.subr.bf16.mxu1 %v4767_v51 }
 0x1a1   : > { %4270 = vmatpush3.bf16.msra.mxu0 %v4768_v52 }
 0x1a2   : > { %4292 = vmatpush3.bf16.msra.mxu1 %v4769_v53  ;;  %4299 = vmatprep.subr.bf16.mxu0 %v4774_v59 }
 0x1a3   : > { %4321 = vmatprep.subr.bf16.mxu1 %v4775_v61 }
 0x1a4   : > { %3331 = vmatmul.mubr.bf16.vlgmr.msra.gmra.mrb[28].mxu0 %v3644_v56 }
 0x1a5   : > { %3371 = vmatmul.mubr.bf16.vlgmr.msra.gmra.mrb[28].mxu1 %v3646_v58  ;;  %4300 = vmatpush3.bf16.msra.mxu0 %v4776_v62 }
 0x1a6   : > { %4322 = vmatpush3.bf16.msra.mxu1 %v4777_v63  ;;  %4301 = vmatprep.subr.bf16.mxu0 %v4778_v0 }
 0x1a7   : > { %4323 = vmatprep.subr.bf16.mxu1 %v4779_v1  ;;  %3450 = vmatprep.mubr.bf16.mxu1 %v3651_v45 }
 0x1a9   : > { %4302 = vmatpush3.bf16.msra.mxu0 %v4780_v2 }
 0x1aa   : > { %4324 = vmatpush3.bf16.msra.mxu1 %v4781_v3  ;;  %4303 = vmatprep.subr.bf16.mxu0 %v4782_v4 }
 0x1ab   : > { %4325 = vmatprep.subr.bf16.mxu1 %v4783_v5 }
 0x1ad   : > { %4304 = vmatpush3.bf16.msra.mxu0 %v4784_v6 }
 0x1ae   : > { %4326 = vmatpush3.bf16.msra.mxu1 %v4785_v7  ;;  %4305 = vmatprep.subr.bf16.mxu0 %v4786_v8 }
 0x1af   : > { %4327 = vmatprep.subr.bf16.mxu1 %v4787_v9 }
 0x1b1   : > { %4306 = vmatpush3.bf16.msra.mxu0 %v4788_v10 }
 0x1b2   : > { %4328 = vmatpush3.bf16.msra.mxu1 %v4789_v11  ;;  %4307 = vmatprep.subr.bf16.mxu0 %v4790_v12 }
 0x1b3   : > { %4329 = vmatprep.subr.bf16.mxu1 %v4791_v13 }
 0x1b5   : > { %4308 = vmatpush3.bf16.msra.mxu0 %v4792_v14 }
 0x1b6   : > { %4330 = vmatpush3.bf16.msra.mxu1 %v4793_v16  ;;  %4309 = vmatprep.subr.bf16.mxu0 %v4794_v19 }
 0x1b7   : > { %v4007_v15 = vpop.f32.mrb[4].mxu0  ;;  %4331 = vmatprep.subr.bf16.mxu1 %v4795_v22 }
 0x1b8   : > { %v4029_v17 = vpop.f32.mrb[4].mxu1  ;;  %v4008_v18 = vpop.f32.mrb[5].mxu0 }
 0x1b9   : > { %v4009_v20 = vadd.f32 %v4008_v18, %v4007_v15  ;;  %v4030_v21 = vpop.f32.mrb[5].mxu1  ;;  %v4010_v24 = vpop.f32.mrb[6].mxu0  ;;  %4310 = vmatpush3.bf16.msra.mxu0 %v4796_v27 }
 0x1ba   : > { %v4031_v23 = vadd.f32 %v4030_v21, %v4029_v17  ;;  %v4032_v25 = vpop.f32.mrb[6].mxu1  ;;  %v4011_v28 = vpop.f32.mrb[7].mxu0  ;;  %4332 = vmatpush3.bf16.msra.mxu1 %v4797_v29  ;;  %4311 = vmatprep.subr.bf16.mxu0 %v4798_v32 }
 0x1bb   : > { %v2853_v26 = vadd.f32 %v4009_v20, %v5661_v43  ;;  %v4033_v30 = vpop.f32.mrb[7].mxu1  ;;  %4333 = vmatprep.subr.bf16.mxu1 %v4799_v33  ;;  %v3649_v43 = vcombine.high %v306_v40, %v306_v40 }
 0x1bd   : > { %v2893_v31 = vadd.f32 %v4031_v23, %v2853_v26  ;;  %4312 = vmatpush3.bf16.msra.mxu0 %v4800_v34  ;;  %3410 = vmatprep.mubr.bf16.mxu0 %v3649_v43 }
 0x1be   : > { %4334 = vmatpush3.bf16.msra.mxu1 %v4801_v35  ;;  %4313 = vmatprep.subr.bf16.mxu0 %v4802_v36 }
 0x1bf   : > { %4335 = vmatprep.subr.bf16.mxu1 %v4803_v37 }
 0x1c1   : > { %4314 = vmatpush3.bf16.msra.mxu0 %v4804_v38 }
 0x1c2   : > { %4336 = vmatpush3.bf16.msra.mxu1 %v4805_v39 }
 0x1c4   : > { %3411 = vmatmul.mubr.bf16.vlgmr.msra.gmra.mrb[32].mxu0 %v3648_v42 }
 0x1c5   : > { %3451 = vmatmul.mubr.bf16.vlgmr.msra.gmra.mrb[32].mxu1 %v3650_v44 }
 0x1d7   : > { %v4051_v46 = vpop.f32.mrb[8].mxu0 }
 0x1d8   : > { %v4073_v47 = vpop.f32.mrb[8].mxu1  ;;  %v4052_v48 = vpop.f32.mrb[9].mxu0 }
 0x1d9   : > { %v4053_v49 = vadd.f32 %v4052_v48, %v4051_v46  ;;  %v4074_v50 = vpop.f32.mrb[9].mxu1  ;;  %v4054_v51 = vpop.f32.mrb[10].mxu0 }
 0x1da   : > { %v4075_v52 = vadd.f32 %v4074_v50, %v4073_v47  ;;  %v4076_v53 = vpop.f32.mrb[10].mxu1  ;;  %v4055_v54 = vpop.f32.mrb[11].mxu0 }
 0x1db   : > { %v2933_v55 = vadd.f32 %v4053_v49, %v2893_v31  ;;  %v4077_v56 = vpop.f32.mrb[11].mxu1 }
 0x1dd   : > { %v2973_v57 = vadd.f32 %v4075_v52, %v2933_v55 }
 0x1f7   : > { %v4095_v58 = vpop.f32.mrb[12].mxu0 }
 0x1f8   : > { %v4117_v59 = vpop.f32.mrb[12].mxu1  ;;  %v4096_v60 = vpop.f32.mrb[13].mxu0 }
 0x1f9   : > { %v4097_v61 = vadd.f32 %v4096_v60, %v4095_v58  ;;  %v4118_v62 = vpop.f32.mrb[13].mxu1  ;;  %v4098_v63 = vpop.f32.mrb[14].mxu0 }
 0x1fa   : > { %v4119_v0 = vadd.f32 %v4118_v62, %v4117_v59  ;;  %v4120_v1 = vpop.f32.mrb[14].mxu1  ;;  %v4099_v2 = vpop.f32.mrb[15].mxu0 }
 0x1fb   : > { %v3013_v3 = vadd.f32 %v4097_v61, %v2973_v57  ;;  %v4121_v4 = vpop.f32.mrb[15].mxu1  ;;  %v289_v1 = vld [vmem:[#allocation2] sm:$0xff] }
 0x1fd   : > { %v3053_v5 = vadd.f32 %v4119_v0, %v3013_v3 }
 0x217   : > { %v4139_v6 = vpop.f32.mrb[16].mxu0 }
 0x218   : > { %v4161_v7 = vpop.f32.mrb[16].mxu1  ;;  %v4140_v8 = vpop.f32.mrb[17].mxu0 }
 0x219   : > { %v4162_v9 = vpop.f32.mrb[17].mxu1  ;;  %v4141_v10 = vadd.f32 %v4140_v8, %v4139_v6  ;;  %v4142_v12 = vpop.f32.mrb[18].mxu0 }
 0x21a   : > { %v4163_v11 = vadd.f32 %v4162_v9, %v4161_v7  ;;  %v4164_v13 = vpop.f32.mrb[18].mxu1  ;;  %v4143_v14 = vpop.f32.mrb[19].mxu0 }
 0x21b   : > { %v4165_v15 = vpop.f32.mrb[19].mxu1  ;;  %v3093_v16 = vadd.f32 %v4141_v10, %v3053_v5 }
 0x21d   : > { %v3133_v17 = vadd.f32 %v4163_v11, %v3093_v16 }
 0x237   : > { %v4183_v18 = vpop.f32.mrb[20].mxu0 }
 0x238   : > { %v4205_v19 = vpop.f32.mrb[20].mxu1  ;;  %v4184_v20 = vpop.f32.mrb[21].mxu0 }
 0x239   : > { %v4185_v21 = vadd.f32 %v4184_v20, %v4183_v18  ;;  %v4206_v22 = vpop.f32.mrb[21].mxu1  ;;  %v4186_v23 = vpop.f32.mrb[22].mxu0 }
 0x23a   : > { %v4207_v24 = vadd.f32 %v4206_v22, %v4205_v19  ;;  %v4208_v25 = vpop.f32.mrb[22].mxu1  ;;  %v4187_v26 = vpop.f32.mrb[23].mxu0 }
 0x23b   : > { %v3173_v27 = vadd.f32 %v4185_v21, %v3133_v17  ;;  %v4209_v28 = vpop.f32.mrb[23].mxu1 }
 0x23d   : > { %v3213_v29 = vadd.f32 %v4207_v24, %v3173_v27 }
 0x257   : > { %v4227_v30 = vpop.f32.mrb[24].mxu0 }
 0x258   : > { %v4249_v31 = vpop.f32.mrb[24].mxu1  ;;  %v4228_v32 = vpop.f32.mrb[25].mxu0 }
 0x259   : > { %v4229_v33 = vadd.f32 %v4228_v32, %v4227_v30  ;;  %v4250_v34 = vpop.f32.mrb[25].mxu1  ;;  %v4230_v35 = vpop.f32.mrb[26].mxu0 }
 0x25a   : > { %v4251_v36 = vadd.f32 %v4250_v34, %v4249_v31  ;;  %v4252_v37 = vpop.f32.mrb[26].mxu1  ;;  %v4231_v38 = vpop.f32.mrb[27].mxu0 }
 0x25b   : > { %v3253_v39 = vadd.f32 %v4229_v33, %v3213_v29  ;;  %v4253_v40 = vpop.f32.mrb[27].mxu1 }
 0x25d   : > { %v3293_v41 = vadd.f32 %v4251_v36, %v3253_v39 }
 0x277   : > { %v4271_v42 = vpop.f32.mrb[28].mxu0 }
 0x278   : > { %v4293_v43 = vpop.f32.mrb[28].mxu1  ;;  %v4272_v44 = vpop.f32.mrb[29].mxu0 }
 0x279   : > { %v4273_v45 = vadd.f32 %v4272_v44, %v4271_v42  ;;  %v4294_v46 = vpop.f32.mrb[29].mxu1  ;;  %v4274_v47 = vpop.f32.mrb[30].mxu0 }
 0x27a   : > { %v4295_v48 = vadd.f32 %v4294_v46, %v4293_v43  ;;  %v4296_v49 = vpop.f32.mrb[30].mxu1  ;;  %v4275_v50 = vpop.f32.mrb[31].mxu0 }
 0x27b   : > { %v3333_v51 = vadd.f32 %v4273_v45, %v3293_v41  ;;  %v4297_v52 = vpop.f32.mrb[31].mxu1 }
 0x27d   : > { %v3373_v53 = vadd.f32 %v4295_v48, %v3333_v51 }
 0x297   : > { %v4315_v54 = vpop.f32.mrb[32].mxu0 }
 0x298   : > { %v4337_v55 = vpop.f32.mrb[32].mxu1  ;;  %v4316_v56 = vpop.f32.mrb[33].mxu0 }
 0x299   : > { %v4317_v57 = vadd.f32 %v4316_v56, %v4315_v54  ;;  %v4338_v58 = vpop.f32.mrb[33].mxu1  ;;  %v4318_v59 = vpop.f32.mrb[34].mxu0 }
 0x29a   : > { %v4339_v60 = vadd.f32 %v4338_v58, %v4337_v55  ;;  %v4340_v61 = vpop.f32.mrb[34].mxu1  ;;  %v4319_v62 = vpop.f32.mrb[35].mxu0 }
 0x29b   : > { %v3413_v63 = vadd.f32 %v4317_v57, %v3373_v53  ;;  %v4341_v0 = vpop.f32.mrb[35].mxu1  ;;  %3463 = sbr.rel (%p3940_p1) target bundleno = 684 (0x2ac), region = 52 }
 0x29d   : > { %v3453_v2 = vadd.f32 %v4339_v60, %v3413_v63 }
 0x29f   : > { %v3458_v3 = vadd.f32 %v3453_v2, %v289_v1 }
 0x2a1   : > { %3459 = vst [vmem:[#allocation2] sm:$0xff] %v3458_v3 }
 0x2a8   : > { %v3464_v4 = vld [vmem:[#allocation2] sm:$0xff] }
 0x2a9   : > { %v3465_v5 = vmax.f32 %v3464_v4, 0.0 }
 0x2ab   : > { %3466 = vst [vmem:[%s5397_s4] sm:$0xff] %v3465_v5 }
 0x2ac PF: > { %s5836_s11 = sld [smem:[#allocation15_spill]]  ;;  %s5837_s23 = sld [smem:[#allocation22_spill]] }
 0x2ad   : > { %s3481_s8 = sshll.u32 %s5397_s4, 4  ;;  %s3468_s20 = scalar_lea.sflag [#allocation5], %s5389_s6  ;;  %s3482_s8 = int_to_ptr.vmem [resolvable:$true] %s3481_s8 }
 0x2ae   : > { %s4900_s21 = scalar_lea.vmem %s3482_s8, 128  ;;  %p5839_p5 = scmp.ne.s32.totalorder %s5828_s30, 0 }
 0x2af   : > { %p4901_p12 = scmp.ne.s32.totalorder %s3482_s8, %s4900_s21  ;;  %s5062_s29 = smov [#allocation9]  }
 0x2b0   : > { %s4904_s1 = sshll.u32 %s5062_s29, 4  ;;  %s4905_s1 = int_to_ptr.vmem [resolvable:$false] %s4904_s1 }
 0x2b1   : > { %p4902_p3 = pnand %p4901_p12, %p5839_p5  ;;  %s4906_s7 = scalar_lea.vmem %s4905_s1, 256 }
 0x2b2   : > { %s3942_s28 = sshll.u32 %s5836_s11, 7  ;;  %s5838_s27 = smov %s5837_s23 }
 0x2b3   : > { %s5715_s0 = scalar_lea.hbm %s5837_s23, %s3942_s28  ;;  %p4903_p11 = pneg %p4902_p3 }
 0x2b4   : > { %p4907_p0 = scmp.lt.s32.totalorder %s3482_s8, %s4905_s1  ;;  %p4908_p10 = scmp.lt.s32.totalorder %s4906_s7, %s4900_s21 }
 0x2b6   : > { %p4909_p6 = por %p4908_p10, %p4907_p0 }
 0x2b8   : > { %p4910_p13 = pnand %p4909_p6, %p4903_p11 }
 0x2ba   : > { %4913 = shalt.err (!%p4910_p13)
}
 0x2bb   : > { %s4914_s5 = scalar_lea.hbm %s5715_s0, 128  ;;  %s4918_s9 = scalar_lea.hbm %s5838_s27, 256 }
 0x2bc   : > { %p4915_p8 = scmp.ne.s32.totalorder %s5715_s0, %s4914_s5  ;;  %p4919_p4 = scmp.lt.u32.totalorder %s5715_s0, %s5838_s27 }
 0x2bd   : > { %p4920_p2 = scmp.lt.u32.totalorder %s4918_s9, %s4914_s5  ;;  %p4922_p12 = scmp.lt.u32.totalorder %s4914_s5, %s5715_s0 }
 0x2be   : > { %p4916_p9 = pnand %p4915_p8, %p5839_p5 }
 0x2bf   : > { %p4921_p1 = por %p4920_p2, %p4919_p4 }
 0x2c0   : > { %p4917_p7 = pneg %p4916_p9 }
 0x2c1   : > { %p4923_p3 = por %p4922_p12, %p4921_p1 }
 0x2c3   : > { %p4924_p11 = pnand %p4923_p3, %p4917_p7 }
 0x2c5   : > { %4927 = shalt.err (!%p4924_p11)
}
 0x2c6   : > { %4353 = dma.vmem_to_hbm [thread:$0]  (%p5839_p5), %s3482_s8, 128, %s5715_s0, %s3468_s20  }
 0x2c7 PF: > { %p4370_p0 = scmp.ge.s32.totalorder %s5054_s25, 2  ;;  %s3493_s28 = sand.u32 1, %s5002_s12  }
 0x2c8   : > { %p5840_p10 = scmp.ne.s32.totalorder %s5829_s26, 0  ;;  %s3494_s15 = scalar_lea.sflag [#allocation5], %s3493_s28 }
 0x2ca   : > { %p4366_p6 = pnand %p4370_p0, %p5840_p10 }
 0x2cc   : > { %4997 = dma.done.wait (!%p4366_p6), %s3494_s15, 128  }
 0x2cd   : > { %4999 = vsyncadd (!%p4366_p6), %s3494_s15, 4294967168  ;;  %s22_s25 = sadd.s32 1, %s5054_s25   ;;  %s5842_s30 = sld [smem:[#allocation14_spill]] }
 0x2ce   : > { %p5741_p13 = scmp.ge.s32.totalorder %s22_s25, 6   ;;  %s5843_s20 = sld [smem:[#allocation19_spill]] }
 0x2cf   : > { %s5844_s21 = sld [smem:[#allocation16_spill]]  ;;  %s5845_s23 = sld [smem:[#allocation17_spill]] }
 0x2d0   : > { %s5846_s26 = sld [smem:[#allocation18_spill]]  ;;  %s5847_s12 = smov %s5006_s13 }
 0x2d1   : > { %s5848_s13 = smov %s5010_s14  ;;  %s5849_s14 = smov %s5317_s3 }
 0x2d2   : > { %s5850_s15 = smov %s5018_s16  ;;  %s5851_s16 = smov %s5022_s17 }
 0x2d3   : > { %s5852_s17 = smov %s5275_s22  ;;  %s5853_s18 = smov %s5030_s19 }
 0x2d4   : > { %s5854_s19 = smov %s5842_s30  ;;  %s5855_s22 = smov %s5050_s24 }
 0x2d5   :  { %21 = sbr.rel (!%p5741_p13) target bundleno = 16 (0x10), region = 109 }
 0x2d6   : > { %s5856_s24 = smov %s5846_s26 }
 0x2dc   :  { %3499 = vsyncpa [#allocation4], 1 }
 0x2dd   :  { %3501 = vsyncpa [#allocation4 + $0x1], 1 }
 0x2de   :  { %3502 = vsyncpa [#allocation7], 1 }
 0x2df   :  { %3504 = vsyncpa [#allocation7 + $0x1], 1 }
 0x2e0   :  { %3505 = vsyncpa [#allocation5], 1 }
 0x2e1   :  { %3507 = vsyncpa [#allocation5 + $0x1], 1 }

</bundles_post_ra>
